<compile_context>
chip_gen: v7x
topology: tpu7x:2x2x1
jax: 0.10.0
libtpu: 0.0.40
codegen_flags: <defaults>
</compile_context>

<pallas_src>
import math

import jax
import jax.numpy as jnp
from jax.experimental import pallas as pl
from jax.experimental.pallas import tpu as pltpu

# ----------------------------- model config -----------------------------------
VOCAB = 100
MAX_POS = 64
TYPE_VOCAB = 2
HIDDEN = 32
NUM_HEADS = 2
HEAD_DIM = HIDDEN // NUM_HEADS
INTERMEDIATE = 64
NUM_LAYERS = 2
LN_EPS = 1e-12

BATCH = 2
SEQ = 8                      # power of two (sequence id = position >> LOG2_SEQ)
LOG2_SEQ = SEQ.bit_length() - 1
BS = BATCH * SEQ

# ------------------- packed small-vector table row layout ---------------------
VEC_W = max(HIDDEN, INTERMEDIATE)      # 64
R_EMB_G, R_EMB_B, R_POOL_B = 0, 1, 2   # global rows
GLOBAL_ROWS = 3
# per-layer rows (base = GLOBAL_ROWS + l * ROWS_PER_LAYER):
#   +0..5 : qkv-head biases, row = base + qkv*NUM_HEADS + h        (width HEAD_DIM)
#   +6    : attention output bias                                  (width HIDDEN)
#   +7,+8 : ln1 gamma, beta                                        (width HIDDEN)
#   +9    : FFN intermediate bias                                  (width INTERMEDIATE)
#   +10   : FFN output bias                                        (width HIDDEN)
#   +11,12: ln2 gamma, beta                                        (width HIDDEN)
ROWS_PER_LAYER = 13
VEC_ROWS = GLOBAL_ROWS + NUM_LAYERS * ROWS_PER_LAYER


# ----------------------------- fused kernel ------------------------------------
def _fused_bert_kernel(ids_col_ref, ids_row_ref, word_emb_ref, emb_static_ref,
                       vecs_ref, wqkv_ref, wo_ref, wi_ref, wo2_ref, pool_w_ref,
                       o_ref):
    def vrow(row, width):
        return vecs_ref[row:row + 1, 0:width]            # (1, width) f32

    def bf16_dot(a_f32, w_bf16):
        # bf16 MXU operands, f32 accumulation.
        return jnp.dot(a_f32.astype(jnp.bfloat16), w_bf16,
                       preferred_element_type=jnp.float32)

    def layernorm(x, g, b):
        mu = jnp.mean(x, axis=-1, keepdims=True)
        xc = x - mu
        var = jnp.mean(xc * xc, axis=-1, keepdims=True)
        return xc * jax.lax.rsqrt(var + LN_EPS) * g + b

    def gelu(y):
        # TODO(synk): HF BertModel with hidden_act='gelu' uses exact erf GELU;
        # the tanh approximation differs slightly (weights here are synthetic).
        return 0.5 * y * (1.0 + jnp.tanh(0.7978845608028654 *
                                         (y + 0.044715 * y * y * y)))

    ids_col = ids_col_ref[...]                            # (BS, 1) int32
    ids_row = ids_row_ref[...]                            # (1, BS) int32

    # ---- word-embedding gather as a one-hot matmul (MXU; no dynamic gather) ----
    vocab_iota = jax.lax.broadcasted_iota(jnp.int32, (BS, VOCAB), 1)
    onehot = (vocab_iota == ids_col).astype(jnp.bfloat16)            # (BS, VOCAB)
    x = jnp.dot(onehot, word_emb_ref[...],
                preferred_element_type=jnp.float32)                   # (BS, H)
    x = x + emb_static_ref[...]                                       # + pos + type
    x = layernorm(x, vrow(R_EMB_G, HIDDEN), vrow(R_EMB_B, HIDDEN))

    # ---- additive attention bias: key padding + block-diagonal over batch ----
    qpos = jax.lax.broadcasted_iota(jnp.int32, (BS, BS), 0)
    kpos = jax.lax.broadcasted_iota(jnp.int32, (BS, BS), 1)
    same_seq = (jax.lax.shift_right_logical(qpos, LOG2_SEQ) ==
                jax.lax.shift_right_logical(kpos, LOG2_SEQ))
    valid = same_seq & (ids_row != 0)
    bias = jnp.where(valid, 0.0, -1e9).astype(jnp.float32)            # (BS, BS)

    for l in range(NUM_LAYERS):                                       # static unroll
        base = GLOBAL_ROWS + l * ROWS_PER_LAYER

        # ---- attention (per-head weights selected on leading axes; no lane slices) ----
        head_outs = []
        for h in range(NUM_HEADS):
            q = bf16_dot(x, wqkv_ref[l, 0, h, :, :]) + vrow(base + 0 * NUM_HEADS + h, HEAD_DIM)
            k = bf16_dot(x, wqkv_ref[l, 1, h, :, :]) + vrow(base + 1 * NUM_HEADS + h, HEAD_DIM)
            v = bf16_dot(x, wqkv_ref[l, 2, h, :, :]) + vrow(base + 2 * NUM_HEADS + h, HEAD_DIM)
            # 1/sqrt(HEAD_DIM) is already folded into the Q weights/bias.
            s = jax.lax.dot_general(q.astype(jnp.bfloat16), k.astype(jnp.bfloat16),
                                    (((1,), (1,)), ((), ())),
                                    preferred_element_type=jnp.float32)   # (BS, BS)
            s = s + bias
            m = jnp.max(s, axis=-1, keepdims=True)
            p = jnp.exp(s - m)
            denom = jnp.sum(p, axis=-1, keepdims=True)
            p = p * pl.reciprocal(denom, approx=True)
            ctx = jnp.dot(p.astype(jnp.bfloat16), v.astype(jnp.bfloat16),
                          preferred_element_type=jnp.float32)             # (BS, DH)
            # head-merge == accumulate through this head's slab of Wo
            head_outs.append(bf16_dot(ctx, wo_ref[l, h, :, :]))           # (BS, H)
        attn = head_outs[0]
        for t in head_outs[1:]:
            attn = attn + t
        attn = attn + vrow(base + 6, HIDDEN)

        # ---- residual + LN ----
        x1 = layernorm(attn + x, vrow(base + 7, HIDDEN), vrow(base + 8, HIDDEN))

        # ---- FFN ----
        ffn = gelu(bf16_dot(x1, wi_ref[l, :, :]) + vrow(base + 9, INTERMEDIATE))
        ffn = bf16_dot(ffn, wo2_ref[l, :, :]) + vrow(base + 10, HIDDEN)
        x = layernorm(ffn + x1, vrow(base + 11, HIDDEN), vrow(base + 12, HIDDEN))

    # ---- pooler: [CLS] token of every sequence -> dense -> tanh ----
    cls = jnp.concatenate([x[b * SEQ:b * SEQ + 1, :] for b in range(BATCH)], axis=0)
    o_ref[...] = jnp.tanh(bf16_dot(cls, pool_w_ref[...]) + vrow(R_POOL_B, HIDDEN))


# ----------------------------- wrapper ------------------------------------------
@jax.jit
def bert_forward(params, input_ids):
    """Equivalent of BERTModel.forward: returns the pooled [CLS] vector (B, HIDDEN)."""
    B, S = input_ids.shape
    assert (B, S) == (BATCH, SEQ)
    ids = input_ids.astype(jnp.int32)
    ids_col = ids.reshape(B * S, 1)        # sublane layout (one-hot gather)
    ids_row = ids.reshape(1, B * S)        # lane layout    (key-padding mask)

    vmem = pl.BlockSpec(memory_space=pltpu.MemorySpace.VMEM)
    pooled = pl.pallas_call(
        _fused_bert_kernel,
        out_shape=jax.ShapeDtypeStruct((B, HIDDEN), jnp.float32),
        in_specs=[vmem] * 10,
        out_specs=vmem,
    )(ids_col, ids_row,
      params["word_emb"], params["emb_static"], params["vecs"],
      params["wqkv"], params["wo"], params["wi"], params["wo2"],
      params["pool_w"])
    return pooled


# ----------------------------- parameter setup ----------------------------------
def init_params(key):
    # TODO(synk): pretrained checkpoint ('./outputs/best_pytorch_model.bin') cannot
    # be loaded; weights are deterministic synthetic initializations with the same
    # structure. All repacking below is a one-off at parameter-build time.
    std = 0.02

    def normal(k, shape):
        return jax.random.normal(k, shape, dtype=jnp.float32) * std

    keys = jax.random.split(key, 4 + NUM_LAYERS * 6)
    ki = iter(keys)

    word_emb = normal(next(ki), (VOCAB, HIDDEN))
    pos_emb = normal(next(ki), (MAX_POS, HIDDEN))
    type_emb = normal(next(ki), (TYPE_VOCAB, HIDDEN))

    # positional + token-type (token_type_ids = 0) slab for the folded batch
    emb_static = jnp.tile(pos_emb[:SEQ], (BATCH, 1)) + type_emb[0][None, :]  # (BS, H)

    scale = 1.0 / math.sqrt(HEAD_DIM)

    def per_head(w):  # (H, H) -> (NUM_HEADS, H, HEAD_DIM)
        return w.reshape(HIDDEN, NUM_HEADS, HEAD_DIM).transpose(1, 0, 2)

    wqkv, wo, wi, wo2 = [], [], [], []
    for _ in range(NUM_LAYERS):
        wq = normal(next(ki), (HIDDEN, HIDDEN)) * scale      # fold 1/sqrt(dh) into Q
        wk = normal(next(ki), (HIDDEN, HIDDEN))
        wv = normal(next(ki), (HIDDEN, HIDDEN))
        wqkv.append(jnp.stack([per_head(wq), per_head(wk), per_head(wv)], axis=0))
        w_out = normal(next(ki), (HIDDEN, HIDDEN))
        wo.append(w_out.reshape(NUM_HEADS, HEAD_DIM, HIDDEN))
        wi.append(normal(next(ki), (HIDDEN, INTERMEDIATE)))
        wo2.append(normal(next(ki), (INTERMEDIATE, HIDDEN)))

    # packed small vectors (biases are zero, LN gammas one in this synthetic init;
    # the q bias rows would also be scaled by 1/sqrt(dh) if nonzero)
    vecs = jnp.zeros((VEC_ROWS, VEC_W), jnp.float32)
    vecs = vecs.at[R_EMB_G, :HIDDEN].set(1.0)                 # embedding LN gamma
    for l in range(NUM_LAYERS):
        base = GLOBAL_ROWS + l * ROWS_PER_LAYER
        vecs = vecs.at[base + 7, :HIDDEN].set(1.0)            # ln1 gamma
        vecs = vecs.at[base + 11, :HIDDEN].set(1.0)           # ln2 gamma

    return {
        "word_emb": word_emb.astype(jnp.bfloat16),            # (V, H)
        "emb_static": emb_static.astype(jnp.float32),         # (BS, H)
        "vecs": vecs,                                          # (VEC_ROWS, 64)
        "wqkv": jnp.stack(wqkv).astype(jnp.bfloat16),          # (L, 3, NH, H, DH)
        "wo": jnp.stack(wo).astype(jnp.bfloat16),              # (L, NH, DH, H)
        "wi": jnp.stack(wi).astype(jnp.bfloat16),              # (L, H, I)
        "wo2": jnp.stack(wo2).astype(jnp.bfloat16),            # (L, I, H)
        "pool_w": normal(next(ki), (HIDDEN, HIDDEN)).astype(jnp.bfloat16),
    }


# ----------------------------- main ---------------------------------------------
if __name__ == "__main__":
    key = jax.random.PRNGKey(0)
    pkey, dkey = jax.random.split(key)

    params = init_params(pkey)

    # deterministic input ids in [1, VOCAB); zero out a tail to exercise the mask
    input_ids = jax.random.randint(dkey, (BATCH, SEQ), 1, VOCAB, dtype=jnp.int32)
    input_ids = input_ids.at[0, -2:].set(0)    # padding tokens -> masked

    pooled = bert_forward(params, input_ids)
    pooled = jax.block_until_ready(pooled)

    assert pooled.shape == (BATCH, HIDDEN)
    assert bool(jnp.all(jnp.isfinite(pooled)))
    print("KERNEL_OK")
</pallas_src>

<mosaic_0001>
module attributes {stable_mosaic.version = 11 : i64} {
  func.func @_fused_bert_kernel(%arg0: memref<16x1xi32, #tpu.memory_space<vmem>>, %arg1: memref<1x16xi32, #tpu.memory_space<vmem>>, %arg2: memref<100x32xbf16, #tpu.memory_space<vmem>>, %arg3: memref<16x32xf32, #tpu.memory_space<vmem>>, %arg4: memref<29x64xf32, #tpu.memory_space<vmem>>, %arg5: memref<2x3x2x32x16xbf16, #tpu.memory_space<vmem>>, %arg6: memref<2x2x16x32xbf16, #tpu.memory_space<vmem>>, %arg7: memref<2x32x64xbf16, #tpu.memory_space<vmem>>, %arg8: memref<2x64x32xbf16, #tpu.memory_space<vmem>>, %arg9: memref<32x32xbf16, #tpu.memory_space<vmem>>, %arg10: memref<2x32xf32, #tpu.memory_space<vmem>>) attributes {dimension_semantics = [], scalar_prefetch = 0 : i64, scratch_operands = 0 : i64, tpu.core_type = #tpu.core_type<tc>} {
    %c0 = arith.constant 0 : index
    %c0_0 = arith.constant 0 : index
    %0 = vector.load %arg0[%c0, %c0_0] : memref<16x1xi32, #tpu.memory_space<vmem>>, vector<16x1xi32>
    %c0_1 = arith.constant 0 : index
    %c0_2 = arith.constant 0 : index
    %1 = vector.load %arg1[%c0_1, %c0_2] : memref<1x16xi32, #tpu.memory_space<vmem>>, vector<1x16xi32>
    %2 = tpu.iota {dimensions = array<i32: 1>} : vector<16x100xi32>
    %3 = vector.broadcast %0 : vector<16x1xi32> to vector<16x100xi32>
    %4 = arith.cmpi eq, %2, %3 : vector<16x100xi32>
    %5 = arith.extui %4 : vector<16x100xi1> to vector<16x100xi32>
    %6 = arith.sitofp %5 : vector<16x100xi32> to vector<16x100xf32>
    %7 = arith.truncf %6 : vector<16x100xf32> to vector<16x100xbf16>
    %c0_3 = arith.constant 0 : index
    %c0_4 = arith.constant 0 : index
    %8 = vector.load %arg2[%c0_3, %c0_4] : memref<100x32xbf16, #tpu.memory_space<vmem>>, vector<100x32xbf16>
    %cst = arith.constant dense<0.000000e+00> : vector<16x32xf32>
    %9 = tpu.matmul %7, %8, %cst {dimension_numbers = #tpu.dot_dimension_numbers<[1], [0], [0], [1], [0, 0, 1, 1], [], []>} : vector<16x100xbf16>, vector<100x32xbf16>, vector<16x32xf32> -> vector<16x32xf32>
    %c0_5 = arith.constant 0 : index
    %c0_6 = arith.constant 0 : index
    %10 = vector.load %arg3[%c0_5, %c0_6] : memref<16x32xf32, #tpu.memory_space<vmem>>, vector<16x32xf32>
    %11 = arith.addf %9, %10 : vector<16x32xf32>
    %c0_7 = arith.constant 0 : index
    %c0_8 = arith.constant 0 : index
    %12 = vector.load %arg4[%c0_7, %c0_8] : memref<29x64xf32, #tpu.memory_space<vmem>>, vector<1x32xf32>
    %c1 = arith.constant 1 : index
    %c0_9 = arith.constant 0 : index
    %13 = vector.load %arg4[%c1, %c0_9] : memref<29x64xf32, #tpu.memory_space<vmem>>, vector<1x32xf32>
    %cst_10 = arith.constant dense<0.000000e+00> : vector<16xf32>
    %14 = vector.multi_reduction <add>, %11, %cst_10 [1] : vector<16x32xf32> to vector<16xf32>
    %15 = vector.shape_cast %14 : vector<16xf32> to vector<16x1xf32>
    %cst_11 = arith.constant 3.200000e+01 : f32
    %16 = vector.broadcast %cst_11 : f32 to vector<16x1xf32>
    %17 = arith.divf %15, %16 : vector<16x1xf32>
    %18 = vector.broadcast %17 : vector<16x1xf32> to vector<16x32xf32>
    %19 = arith.subf %11, %18 : vector<16x32xf32>
    %20 = arith.mulf %19, %19 : vector<16x32xf32>
    %cst_12 = arith.constant dense<0.000000e+00> : vector<16xf32>
    %21 = vector.multi_reduction <add>, %20, %cst_12 [1] : vector<16x32xf32> to vector<16xf32>
    %22 = vector.shape_cast %21 : vector<16xf32> to vector<16x1xf32>
    %cst_13 = arith.constant 3.200000e+01 : f32
    %23 = vector.broadcast %cst_13 : f32 to vector<16x1xf32>
    %24 = arith.divf %22, %23 : vector<16x1xf32>
    %cst_14 = arith.constant 9.99999996E-13 : f32
    %25 = vector.broadcast %cst_14 : f32 to vector<16x1xf32>
    %26 = arith.addf %24, %25 : vector<16x1xf32>
    %27 = math.rsqrt %26 : vector<16x1xf32>
    %28 = vector.broadcast %27 : vector<16x1xf32> to vector<16x32xf32>
    %29 = arith.mulf %19, %28 : vector<16x32xf32>
    %30 = vector.broadcast %12 : vector<1x32xf32> to vector<16x32xf32>
    %31 = arith.mulf %29, %30 : vector<16x32xf32>
    %32 = vector.broadcast %13 : vector<1x32xf32> to vector<16x32xf32>
    %33 = arith.addf %31, %32 : vector<16x32xf32>
    %34 = tpu.iota {dimensions = array<i32: 0>} : vector<16x16xi32>
    %35 = tpu.iota {dimensions = array<i32: 1>} : vector<16x16xi32>
    %c3_i32 = arith.constant 3 : i32
    %36 = vector.broadcast %c3_i32 : i32 to vector<16x16xi32>
    %37 = arith.shrui %34, %36 : vector<16x16xi32>
    %c3_i32_15 = arith.constant 3 : i32
    %38 = vector.broadcast %c3_i32_15 : i32 to vector<16x16xi32>
    %39 = arith.shrui %35, %38 : vector<16x16xi32>
    %40 = arith.cmpi eq, %37, %39 : vector<16x16xi32>
    %c0_i32 = arith.constant 0 : i32
    %41 = vector.broadcast %c0_i32 : i32 to vector<1x16xi32>
    %42 = arith.cmpi ne, %1, %41 : vector<1x16xi32>
    %43 = vector.broadcast %42 : vector<1x16xi1> to vector<16x16xi1>
    %44 = arith.andi %40, %43 : vector<16x16xi1>
    %cst_16 = arith.constant 0.000000e+00 : f32
    %cst_17 = arith.constant -1.000000e+09 : f32
    %45 = vector.broadcast %cst_16 : f32 to vector<16x16xf32>
    %46 = vector.broadcast %cst_17 : f32 to vector<16x16xf32>
    %47 = arith.select %44, %45, %46 : vector<16x16xi1>, vector<16x16xf32>
    %c0_18 = arith.constant 0 : index
    %c0_19 = arith.constant 0 : index
    %c0_20 = arith.constant 0 : index
    %c0_21 = arith.constant 0 : index
    %c0_22 = arith.constant 0 : index
    %48 = vector.load %arg5[%c0_18, %c0_19, %c0_20, %c0_21, %c0_22] : memref<2x3x2x32x16xbf16, #tpu.memory_space<vmem>>, vector<1x1x1x32x16xbf16>
    %49 = vector.shape_cast %48 : vector<1x1x1x32x16xbf16> to vector<32x16xbf16>
    %50 = arith.truncf %33 : vector<16x32xf32> to vector<16x32xbf16>
    %cst_23 = arith.constant dense<0.000000e+00> : vector<16x16xf32>
    %51 = tpu.matmul %50, %49, %cst_23 {dimension_numbers = #tpu.dot_dimension_numbers<[1], [0], [0], [1], [0, 0, 1, 1], [], []>} : vector<16x32xbf16>, vector<32x16xbf16>, vector<16x16xf32> -> vector<16x16xf32>
    %c3 = arith.constant 3 : index
    %c0_24 = arith.constant 0 : index
    %52 = vector.load %arg4[%c3, %c0_24] : memref<29x64xf32, #tpu.memory_space<vmem>>, vector<1x16xf32>
    %53 = vector.broadcast %52 : vector<1x16xf32> to vector<16x16xf32>
    %54 = arith.addf %51, %53 : vector<16x16xf32>
    %c0_25 = arith.constant 0 : index
    %c1_26 = arith.constant 1 : index
    %c0_27 = arith.constant 0 : index
    %c0_28 = arith.constant 0 : index
    %c0_29 = arith.constant 0 : index
    %55 = vector.load %arg5[%c0_25, %c1_26, %c0_27, %c0_28, %c0_29] : memref<2x3x2x32x16xbf16, #tpu.memory_space<vmem>>, vector<1x1x1x32x16xbf16>
    %56 = vector.shape_cast %55 : vector<1x1x1x32x16xbf16> to vector<32x16xbf16>
    %57 = arith.truncf %33 : vector<16x32xf32> to vector<16x32xbf16>
    %cst_30 = arith.constant dense<0.000000e+00> : vector<16x16xf32>
    %58 = tpu.matmul %57, %56, %cst_30 {dimension_numbers = #tpu.dot_dimension_numbers<[1], [0], [0], [1], [0, 0, 1, 1], [], []>} : vector<16x32xbf16>, vector<32x16xbf16>, vector<16x16xf32> -> vector<16x16xf32>
    %c5 = arith.constant 5 : index
    %c0_31 = arith.constant 0 : index
    %59 = vector.load %arg4[%c5, %c0_31] : memref<29x64xf32, #tpu.memory_space<vmem>>, vector<1x16xf32>
    %60 = vector.broadcast %59 : vector<1x16xf32> to vector<16x16xf32>
    %61 = arith.addf %58, %60 : vector<16x16xf32>
    %c0_32 = arith.constant 0 : index
    %c2 = arith.constant 2 : index
    %c0_33 = arith.constant 0 : index
    %c0_34 = arith.constant 0 : index
    %c0_35 = arith.constant 0 : index
    %62 = vector.load %arg5[%c0_32, %c2, %c0_33, %c0_34, %c0_35] : memref<2x3x2x32x16xbf16, #tpu.memory_space<vmem>>, vector<1x1x1x32x16xbf16>
    %63 = vector.shape_cast %62 : vector<1x1x1x32x16xbf16> to vector<32x16xbf16>
    %64 = arith.truncf %33 : vector<16x32xf32> to vector<16x32xbf16>
    %cst_36 = arith.constant dense<0.000000e+00> : vector<16x16xf32>
    %65 = tpu.matmul %64, %63, %cst_36 {dimension_numbers = #tpu.dot_dimension_numbers<[1], [0], [0], [1], [0, 0, 1, 1], [], []>} : vector<16x32xbf16>, vector<32x16xbf16>, vector<16x16xf32> -> vector<16x16xf32>
    %c7 = arith.constant 7 : index
    %c0_37 = arith.constant 0 : index
    %66 = vector.load %arg4[%c7, %c0_37] : memref<29x64xf32, #tpu.memory_space<vmem>>, vector<1x16xf32>
    %67 = vector.broadcast %66 : vector<1x16xf32> to vector<16x16xf32>
    %68 = arith.addf %65, %67 : vector<16x16xf32>
    %69 = arith.truncf %54 : vector<16x16xf32> to vector<16x16xbf16>
    %70 = arith.truncf %61 : vector<16x16xf32> to vector<16x16xbf16>
    %cst_38 = arith.constant dense<0.000000e+00> : vector<16x16xf32>
    %71 = tpu.matmul %69, %70, %cst_38 {dimension_numbers = #tpu.dot_dimension_numbers<[1], [1], [0], [0], [0, 0, 1, 0], [], []>} : vector<16x16xbf16>, vector<16x16xbf16>, vector<16x16xf32> -> vector<16x16xf32>
    %72 = arith.addf %71, %47 : vector<16x16xf32>
    %cst_39 = arith.constant dense<0xFF800000> : vector<16xf32>
    %73 = vector.multi_reduction <maximumf>, %72, %cst_39 [1] : vector<16x16xf32> to vector<16xf32>
    %74 = vector.shape_cast %73 : vector<16xf32> to vector<16x1xf32>
    %75 = vector.broadcast %74 : vector<16x1xf32> to vector<16x16xf32>
    %76 = arith.subf %72, %75 : vector<16x16xf32>
    %77 = math.exp %76 : vector<16x16xf32>
    %cst_40 = arith.constant dense<0.000000e+00> : vector<16xf32>
    %78 = vector.multi_reduction <add>, %77, %cst_40 [1] : vector<16x16xf32> to vector<16xf32>
    %79 = vector.shape_cast %78 : vector<16xf32> to vector<16x1xf32>
    %80 = tpu.reciprocal %79 {approx = true} : vector<16x1xf32> -> vector<16x1xf32>
    %81 = vector.broadcast %80 : vector<16x1xf32> to vector<16x16xf32>
    %82 = arith.mulf %77, %81 : vector<16x16xf32>
    %83 = arith.truncf %82 : vector<16x16xf32> to vector<16x16xbf16>
    %84 = arith.truncf %68 : vector<16x16xf32> to vector<16x16xbf16>
    %cst_41 = arith.constant dense<0.000000e+00> : vector<16x16xf32>
    %85 = tpu.matmul %83, %84, %cst_41 {dimension_numbers = #tpu.dot_dimension_numbers<[1], [0], [0], [1], [0, 0, 1, 1], [], []>} : vector<16x16xbf16>, vector<16x16xbf16>, vector<16x16xf32> -> vector<16x16xf32>
    %c0_42 = arith.constant 0 : index
    %c0_43 = arith.constant 0 : index
    %c0_44 = arith.constant 0 : index
    %c0_45 = arith.constant 0 : index
    %86 = vector.load %arg6[%c0_42, %c0_43, %c0_44, %c0_45] : memref<2x2x16x32xbf16, #tpu.memory_space<vmem>>, vector<1x1x16x32xbf16>
    %87 = vector.shape_cast %86 : vector<1x1x16x32xbf16> to vector<16x32xbf16>
    %88 = arith.truncf %85 : vector<16x16xf32> to vector<16x16xbf16>
    %cst_46 = arith.constant dense<0.000000e+00> : vector<16x32xf32>
    %89 = tpu.matmul %88, %87, %cst_46 {dimension_numbers = #tpu.dot_dimension_numbers<[1], [0], [0], [1], [0, 0, 1, 1], [], []>} : vector<16x16xbf16>, vector<16x32xbf16>, vector<16x32xf32> -> vector<16x32xf32>
    %c0_47 = arith.constant 0 : index
    %c0_48 = arith.constant 0 : index
    %c1_49 = arith.constant 1 : index
    %c0_50 = arith.constant 0 : index
    %c0_51 = arith.constant 0 : index
    %90 = vector.load %arg5[%c0_47, %c0_48, %c1_49, %c0_50, %c0_51] : memref<2x3x2x32x16xbf16, #tpu.memory_space<vmem>>, vector<1x1x1x32x16xbf16>
    %91 = vector.shape_cast %90 : vector<1x1x1x32x16xbf16> to vector<32x16xbf16>
    %92 = arith.truncf %33 : vector<16x32xf32> to vector<16x32xbf16>
    %cst_52 = arith.constant dense<0.000000e+00> : vector<16x16xf32>
    %93 = tpu.matmul %92, %91, %cst_52 {dimension_numbers = #tpu.dot_dimension_numbers<[1], [0], [0], [1], [0, 0, 1, 1], [], []>} : vector<16x32xbf16>, vector<32x16xbf16>, vector<16x16xf32> -> vector<16x16xf32>
    %c4 = arith.constant 4 : index
    %c0_53 = arith.constant 0 : index
    %94 = vector.load %arg4[%c4, %c0_53] : memref<29x64xf32, #tpu.memory_space<vmem>>, vector<1x16xf32>
    %95 = vector.broadcast %94 : vector<1x16xf32> to vector<16x16xf32>
    %96 = arith.addf %93, %95 : vector<16x16xf32>
    %c0_54 = arith.constant 0 : index
    %c1_55 = arith.constant 1 : index
    %c1_56 = arith.constant 1 : index
    %c0_57 = arith.constant 0 : index
    %c0_58 = arith.constant 0 : index
    %97 = vector.load %arg5[%c0_54, %c1_55, %c1_56, %c0_57, %c0_58] : memref<2x3x2x32x16xbf16, #tpu.memory_space<vmem>>, vector<1x1x1x32x16xbf16>
    %98 = vector.shape_cast %97 : vector<1x1x1x32x16xbf16> to vector<32x16xbf16>
    %99 = arith.truncf %33 : vector<16x32xf32> to vector<16x32xbf16>
    %cst_59 = arith.constant dense<0.000000e+00> : vector<16x16xf32>
    %100 = tpu.matmul %99, %98, %cst_59 {dimension_numbers = #tpu.dot_dimension_numbers<[1], [0], [0], [1], [0, 0, 1, 1], [], []>} : vector<16x32xbf16>, vector<32x16xbf16>, vector<16x16xf32> -> vector<16x16xf32>
    %c6 = arith.constant 6 : index
    %c0_60 = arith.constant 0 : index
    %101 = vector.load %arg4[%c6, %c0_60] : memref<29x64xf32, #tpu.memory_space<vmem>>, vector<1x16xf32>
    %102 = vector.broadcast %101 : vector<1x16xf32> to vector<16x16xf32>
    %103 = arith.addf %100, %102 : vector<16x16xf32>
    %c0_61 = arith.constant 0 : index
    %c2_62 = arith.constant 2 : index
    %c1_63 = arith.constant 1 : index
    %c0_64 = arith.constant 0 : index
    %c0_65 = arith.constant 0 : index
    %104 = vector.load %arg5[%c0_61, %c2_62, %c1_63, %c0_64, %c0_65] : memref<2x3x2x32x16xbf16, #tpu.memory_space<vmem>>, vector<1x1x1x32x16xbf16>
    %105 = vector.shape_cast %104 : vector<1x1x1x32x16xbf16> to vector<32x16xbf16>
    %106 = arith.truncf %33 : vector<16x32xf32> to vector<16x32xbf16>
    %cst_66 = arith.constant dense<0.000000e+00> : vector<16x16xf32>
    %107 = tpu.matmul %106, %105, %cst_66 {dimension_numbers = #tpu.dot_dimension_numbers<[1], [0], [0], [1], [0, 0, 1, 1], [], []>} : vector<16x32xbf16>, vector<32x16xbf16>, vector<16x16xf32> -> vector<16x16xf32>
    %c8 = arith.constant 8 : index
    %c0_67 = arith.constant 0 : index
    %108 = vector.load %arg4[%c8, %c0_67] : memref<29x64xf32, #tpu.memory_space<vmem>>, vector<1x16xf32>
    %109 = vector.broadcast %108 : vector<1x16xf32> to vector<16x16xf32>
    %110 = arith.addf %107, %109 : vector<16x16xf32>
    %111 = arith.truncf %96 : vector<16x16xf32> to vector<16x16xbf16>
    %112 = arith.truncf %103 : vector<16x16xf32> to vector<16x16xbf16>
    %cst_68 = arith.constant dense<0.000000e+00> : vector<16x16xf32>
    %113 = tpu.matmul %111, %112, %cst_68 {dimension_numbers = #tpu.dot_dimension_numbers<[1], [1], [0], [0], [0, 0, 1, 0], [], []>} : vector<16x16xbf16>, vector<16x16xbf16>, vector<16x16xf32> -> vector<16x16xf32>
    %114 = arith.addf %113, %47 : vector<16x16xf32>
    %cst_69 = arith.constant dense<0xFF800000> : vector<16xf32>
    %115 = vector.multi_reduction <maximumf>, %114, %cst_69 [1] : vector<16x16xf32> to vector<16xf32>
    %116 = vector.shape_cast %115 : vector<16xf32> to vector<16x1xf32>
    %117 = vector.broadcast %116 : vector<16x1xf32> to vector<16x16xf32>
    %118 = arith.subf %114, %117 : vector<16x16xf32>
    %119 = math.exp %118 : vector<16x16xf32>
    %cst_70 = arith.constant dense<0.000000e+00> : vector<16xf32>
    %120 = vector.multi_reduction <add>, %119, %cst_70 [1] : vector<16x16xf32> to vector<16xf32>
    %121 = vector.shape_cast %120 : vector<16xf32> to vector<16x1xf32>
    %122 = tpu.reciprocal %121 {approx = true} : vector<16x1xf32> -> vector<16x1xf32>
    %123 = vector.broadcast %122 : vector<16x1xf32> to vector<16x16xf32>
    %124 = arith.mulf %119, %123 : vector<16x16xf32>
    %125 = arith.truncf %124 : vector<16x16xf32> to vector<16x16xbf16>
    %126 = arith.truncf %110 : vector<16x16xf32> to vector<16x16xbf16>
    %cst_71 = arith.constant dense<0.000000e+00> : vector<16x16xf32>
    %127 = tpu.matmul %125, %126, %cst_71 {dimension_numbers = #tpu.dot_dimension_numbers<[1], [0], [0], [1], [0, 0, 1, 1], [], []>} : vector<16x16xbf16>, vector<16x16xbf16>, vector<16x16xf32> -> vector<16x16xf32>
    %c0_72 = arith.constant 0 : index
    %c1_73 = arith.constant 1 : index
    %c0_74 = arith.constant 0 : index
    %c0_75 = arith.constant 0 : index
    %128 = vector.load %arg6[%c0_72, %c1_73, %c0_74, %c0_75] : memref<2x2x16x32xbf16, #tpu.memory_space<vmem>>, vector<1x1x16x32xbf16>
    %129 = vector.shape_cast %128 : vector<1x1x16x32xbf16> to vector<16x32xbf16>
    %130 = arith.truncf %127 : vector<16x16xf32> to vector<16x16xbf16>
    %cst_76 = arith.constant dense<0.000000e+00> : vector<16x32xf32>
    %131 = tpu.matmul %130, %129, %cst_76 {dimension_numbers = #tpu.dot_dimension_numbers<[1], [0], [0], [1], [0, 0, 1, 1], [], []>} : vector<16x16xbf16>, vector<16x32xbf16>, vector<16x32xf32> -> vector<16x32xf32>
    %132 = arith.addf %89, %131 : vector<16x32xf32>
    %c9 = arith.constant 9 : index
    %c0_77 = arith.constant 0 : index
    %133 = vector.load %arg4[%c9, %c0_77] : memref<29x64xf32, #tpu.memory_space<vmem>>, vector<1x32xf32>
    %134 = vector.broadcast %133 : vector<1x32xf32> to vector<16x32xf32>
    %135 = arith.addf %132, %134 : vector<16x32xf32>
    %136 = arith.addf %135, %33 : vector<16x32xf32>
    %c10 = arith.constant 10 : index
    %c0_78 = arith.constant 0 : index
    %137 = vector.load %arg4[%c10, %c0_78] : memref<29x64xf32, #tpu.memory_space<vmem>>, vector<1x32xf32>
    %c11 = arith.constant 11 : index
    %c0_79 = arith.constant 0 : index
    %138 = vector.load %arg4[%c11, %c0_79] : memref<29x64xf32, #tpu.memory_space<vmem>>, vector<1x32xf32>
    %cst_80 = arith.constant dense<0.000000e+00> : vector<16xf32>
    %139 = vector.multi_reduction <add>, %136, %cst_80 [1] : vector<16x32xf32> to vector<16xf32>
    %140 = vector.shape_cast %139 : vector<16xf32> to vector<16x1xf32>
    %cst_81 = arith.constant 3.200000e+01 : f32
    %141 = vector.broadcast %cst_81 : f32 to vector<16x1xf32>
    %142 = arith.divf %140, %141 : vector<16x1xf32>
    %143 = vector.broadcast %142 : vector<16x1xf32> to vector<16x32xf32>
    %144 = arith.subf %136, %143 : vector<16x32xf32>
    %145 = arith.mulf %144, %144 : vector<16x32xf32>
    %cst_82 = arith.constant dense<0.000000e+00> : vector<16xf32>
    %146 = vector.multi_reduction <add>, %145, %cst_82 [1] : vector<16x32xf32> to vector<16xf32>
    %147 = vector.shape_cast %146 : vector<16xf32> to vector<16x1xf32>
    %cst_83 = arith.constant 3.200000e+01 : f32
    %148 = vector.broadcast %cst_83 : f32 to vector<16x1xf32>
    %149 = arith.divf %147, %148 : vector<16x1xf32>
    %cst_84 = arith.constant 9.99999996E-13 : f32
    %150 = vector.broadcast %cst_84 : f32 to vector<16x1xf32>
    %151 = arith.addf %149, %150 : vector<16x1xf32>
    %152 = math.rsqrt %151 : vector<16x1xf32>
    %153 = vector.broadcast %152 : vector<16x1xf32> to vector<16x32xf32>
    %154 = arith.mulf %144, %153 : vector<16x32xf32>
    %155 = vector.broadcast %137 : vector<1x32xf32> to vector<16x32xf32>
    %156 = arith.mulf %154, %155 : vector<16x32xf32>
    %157 = vector.broadcast %138 : vector<1x32xf32> to vector<16x32xf32>
    %158 = arith.addf %156, %157 : vector<16x32xf32>
    %c0_85 = arith.constant 0 : index
    %c0_86 = arith.constant 0 : index
    %c0_87 = arith.constant 0 : index
    %159 = vector.load %arg7[%c0_85, %c0_86, %c0_87] : memref<2x32x64xbf16, #tpu.memory_space<vmem>>, vector<1x32x64xbf16>
    %160 = vector.shape_cast %159 : vector<1x32x64xbf16> to vector<32x64xbf16>
    %161 = arith.truncf %158 : vector<16x32xf32> to vector<16x32xbf16>
    %cst_88 = arith.constant dense<0.000000e+00> : vector<16x64xf32>
    %162 = tpu.matmul %161, %160, %cst_88 {dimension_numbers = #tpu.dot_dimension_numbers<[1], [0], [0], [1], [0, 0, 1, 1], [], []>} : vector<16x32xbf16>, vector<32x64xbf16>, vector<16x64xf32> -> vector<16x64xf32>
    %c12 = arith.constant 12 : index
    %c0_89 = arith.constant 0 : index
    %163 = vector.load %arg4[%c12, %c0_89] : memref<29x64xf32, #tpu.memory_space<vmem>>, vector<1x64xf32>
    %164 = vector.broadcast %163 : vector<1x64xf32> to vector<16x64xf32>
    %165 = arith.addf %162, %164 : vector<16x64xf32>
    %cst_90 = arith.constant 5.000000e-01 : f32
    %166 = vector.broadcast %cst_90 : f32 to vector<16x64xf32>
    %167 = arith.mulf %166, %165 : vector<16x64xf32>
    %cst_91 = arith.constant 4.471500e-02 : f32
    %168 = vector.broadcast %cst_91 : f32 to vector<16x64xf32>
    %169 = arith.mulf %168, %165 : vector<16x64xf32>
    %170 = arith.mulf %169, %165 : vector<16x64xf32>
    %171 = arith.mulf %170, %165 : vector<16x64xf32>
    %172 = arith.addf %165, %171 : vector<16x64xf32>
    %cst_92 = arith.constant 0.797884583 : f32
    %173 = vector.broadcast %cst_92 : f32 to vector<16x64xf32>
    %174 = arith.mulf %173, %172 : vector<16x64xf32>
    %175 = math.tanh %174 : vector<16x64xf32>
    %cst_93 = arith.constant 1.000000e+00 : f32
    %176 = vector.broadcast %cst_93 : f32 to vector<16x64xf32>
    %177 = arith.addf %176, %175 : vector<16x64xf32>
    %178 = arith.mulf %167, %177 : vector<16x64xf32>
    %c0_94 = arith.constant 0 : index
    %c0_95 = arith.constant 0 : index
    %c0_96 = arith.constant 0 : index
    %179 = vector.load %arg8[%c0_94, %c0_95, %c0_96] : memref<2x64x32xbf16, #tpu.memory_space<vmem>>, vector<1x64x32xbf16>
    %180 = vector.shape_cast %179 : vector<1x64x32xbf16> to vector<64x32xbf16>
    %181 = arith.truncf %178 : vector<16x64xf32> to vector<16x64xbf16>
    %cst_97 = arith.constant dense<0.000000e+00> : vector<16x32xf32>
    %182 = tpu.matmul %181, %180, %cst_97 {dimension_numbers = #tpu.dot_dimension_numbers<[1], [0], [0], [1], [0, 0, 1, 1], [], []>} : vector<16x64xbf16>, vector<64x32xbf16>, vector<16x32xf32> -> vector<16x32xf32>
    %c13 = arith.constant 13 : index
    %c0_98 = arith.constant 0 : index
    %183 = vector.load %arg4[%c13, %c0_98] : memref<29x64xf32, #tpu.memory_space<vmem>>, vector<1x32xf32>
    %184 = vector.broadcast %183 : vector<1x32xf32> to vector<16x32xf32>
    %185 = arith.addf %182, %184 : vector<16x32xf32>
    %186 = arith.addf %185, %158 : vector<16x32xf32>
    %c14 = arith.constant 14 : index
    %c0_99 = arith.constant 0 : index
    %187 = vector.load %arg4[%c14, %c0_99] : memref<29x64xf32, #tpu.memory_space<vmem>>, vector<1x32xf32>
    %c15 = arith.constant 15 : index
    %c0_100 = arith.constant 0 : index
    %188 = vector.load %arg4[%c15, %c0_100] : memref<29x64xf32, #tpu.memory_space<vmem>>, vector<1x32xf32>
    %cst_101 = arith.constant dense<0.000000e+00> : vector<16xf32>
    %189 = vector.multi_reduction <add>, %186, %cst_101 [1] : vector<16x32xf32> to vector<16xf32>
    %190 = vector.shape_cast %189 : vector<16xf32> to vector<16x1xf32>
    %cst_102 = arith.constant 3.200000e+01 : f32
    %191 = vector.broadcast %cst_102 : f32 to vector<16x1xf32>
    %192 = arith.divf %190, %191 : vector<16x1xf32>
    %193 = vector.broadcast %192 : vector<16x1xf32> to vector<16x32xf32>
    %194 = arith.subf %186, %193 : vector<16x32xf32>
    %195 = arith.mulf %194, %194 : vector<16x32xf32>
    %cst_103 = arith.constant dense<0.000000e+00> : vector<16xf32>
    %196 = vector.multi_reduction <add>, %195, %cst_103 [1] : vector<16x32xf32> to vector<16xf32>
    %197 = vector.shape_cast %196 : vector<16xf32> to vector<16x1xf32>
    %cst_104 = arith.constant 3.200000e+01 : f32
    %198 = vector.broadcast %cst_104 : f32 to vector<16x1xf32>
    %199 = arith.divf %197, %198 : vector<16x1xf32>
    %cst_105 = arith.constant 9.99999996E-13 : f32
    %200 = vector.broadcast %cst_105 : f32 to vector<16x1xf32>
    %201 = arith.addf %199, %200 : vector<16x1xf32>
    %202 = math.rsqrt %201 : vector<16x1xf32>
    %203 = vector.broadcast %202 : vector<16x1xf32> to vector<16x32xf32>
    %204 = arith.mulf %194, %203 : vector<16x32xf32>
    %205 = vector.broadcast %187 : vector<1x32xf32> to vector<16x32xf32>
    %206 = arith.mulf %204, %205 : vector<16x32xf32>
    %207 = vector.broadcast %188 : vector<1x32xf32> to vector<16x32xf32>
    %208 = arith.addf %206, %207 : vector<16x32xf32>
    %c1_106 = arith.constant 1 : index
    %c0_107 = arith.constant 0 : index
    %c0_108 = arith.constant 0 : index
    %c0_109 = arith.constant 0 : index
    %c0_110 = arith.constant 0 : index
    %209 = vector.load %arg5[%c1_106, %c0_107, %c0_108, %c0_109, %c0_110] : memref<2x3x2x32x16xbf16, #tpu.memory_space<vmem>>, vector<1x1x1x32x16xbf16>
    %210 = vector.shape_cast %209 : vector<1x1x1x32x16xbf16> to vector<32x16xbf16>
    %211 = arith.truncf %208 : vector<16x32xf32> to vector<16x32xbf16>
    %cst_111 = arith.constant dense<0.000000e+00> : vector<16x16xf32>
    %212 = tpu.matmul %211, %210, %cst_111 {dimension_numbers = #tpu.dot_dimension_numbers<[1], [0], [0], [1], [0, 0, 1, 1], [], []>} : vector<16x32xbf16>, vector<32x16xbf16>, vector<16x16xf32> -> vector<16x16xf32>
    %c16 = arith.constant 16 : index
    %c0_112 = arith.constant 0 : index
    %213 = vector.load %arg4[%c16, %c0_112] : memref<29x64xf32, #tpu.memory_space<vmem>>, vector<1x16xf32>
    %214 = vector.broadcast %213 : vector<1x16xf32> to vector<16x16xf32>
    %215 = arith.addf %212, %214 : vector<16x16xf32>
    %c1_113 = arith.constant 1 : index
    %c1_114 = arith.constant 1 : index
    %c0_115 = arith.constant 0 : index
    %c0_116 = arith.constant 0 : index
    %c0_117 = arith.constant 0 : index
    %216 = vector.load %arg5[%c1_113, %c1_114, %c0_115, %c0_116, %c0_117] : memref<2x3x2x32x16xbf16, #tpu.memory_space<vmem>>, vector<1x1x1x32x16xbf16>
    %217 = vector.shape_cast %216 : vector<1x1x1x32x16xbf16> to vector<32x16xbf16>
    %218 = arith.truncf %208 : vector<16x32xf32> to vector<16x32xbf16>
    %cst_118 = arith.constant dense<0.000000e+00> : vector<16x16xf32>
    %219 = tpu.matmul %218, %217, %cst_118 {dimension_numbers = #tpu.dot_dimension_numbers<[1], [0], [0], [1], [0, 0, 1, 1], [], []>} : vector<16x32xbf16>, vector<32x16xbf16>, vector<16x16xf32> -> vector<16x16xf32>
    %c18 = arith.constant 18 : index
    %c0_119 = arith.constant 0 : index
    %220 = vector.load %arg4[%c18, %c0_119] : memref<29x64xf32, #tpu.memory_space<vmem>>, vector<1x16xf32>
    %221 = vector.broadcast %220 : vector<1x16xf32> to vector<16x16xf32>
    %222 = arith.addf %219, %221 : vector<16x16xf32>
    %c1_120 = arith.constant 1 : index
    %c2_121 = arith.constant 2 : index
    %c0_122 = arith.constant 0 : index
    %c0_123 = arith.constant 0 : index
    %c0_124 = arith.constant 0 : index
    %223 = vector.load %arg5[%c1_120, %c2_121, %c0_122, %c0_123, %c0_124] : memref<2x3x2x32x16xbf16, #tpu.memory_space<vmem>>, vector<1x1x1x32x16xbf16>
    %224 = vector.shape_cast %223 : vector<1x1x1x32x16xbf16> to vector<32x16xbf16>
    %225 = arith.truncf %208 : vector<16x32xf32> to vector<16x32xbf16>
    %cst_125 = arith.constant dense<0.000000e+00> : vector<16x16xf32>
    %226 = tpu.matmul %225, %224, %cst_125 {dimension_numbers = #tpu.dot_dimension_numbers<[1], [0], [0], [1], [0, 0, 1, 1], [], []>} : vector<16x32xbf16>, vector<32x16xbf16>, vector<16x16xf32> -> vector<16x16xf32>
    %c20 = arith.constant 20 : index
    %c0_126 = arith.constant 0 : index
    %227 = vector.load %arg4[%c20, %c0_126] : memref<29x64xf32, #tpu.memory_space<vmem>>, vector<1x16xf32>
    %228 = vector.broadcast %227 : vector<1x16xf32> to vector<16x16xf32>
    %229 = arith.addf %226, %228 : vector<16x16xf32>
    %230 = arith.truncf %215 : vector<16x16xf32> to vector<16x16xbf16>
    %231 = arith.truncf %222 : vector<16x16xf32> to vector<16x16xbf16>
    %cst_127 = arith.constant dense<0.000000e+00> : vector<16x16xf32>
    %232 = tpu.matmul %230, %231, %cst_127 {dimension_numbers = #tpu.dot_dimension_numbers<[1], [1], [0], [0], [0, 0, 1, 0], [], []>} : vector<16x16xbf16>, vector<16x16xbf16>, vector<16x16xf32> -> vector<16x16xf32>
    %233 = arith.addf %232, %47 : vector<16x16xf32>
    %cst_128 = arith.constant dense<0xFF800000> : vector<16xf32>
    %234 = vector.multi_reduction <maximumf>, %233, %cst_128 [1] : vector<16x16xf32> to vector<16xf32>
    %235 = vector.shape_cast %234 : vector<16xf32> to vector<16x1xf32>
    %236 = vector.broadcast %235 : vector<16x1xf32> to vector<16x16xf32>
    %237 = arith.subf %233, %236 : vector<16x16xf32>
    %238 = math.exp %237 : vector<16x16xf32>
    %cst_129 = arith.constant dense<0.000000e+00> : vector<16xf32>
    %239 = vector.multi_reduction <add>, %238, %cst_129 [1] : vector<16x16xf32> to vector<16xf32>
    %240 = vector.shape_cast %239 : vector<16xf32> to vector<16x1xf32>
    %241 = tpu.reciprocal %240 {approx = true} : vector<16x1xf32> -> vector<16x1xf32>
    %242 = vector.broadcast %241 : vector<16x1xf32> to vector<16x16xf32>
    %243 = arith.mulf %238, %242 : vector<16x16xf32>
    %244 = arith.truncf %243 : vector<16x16xf32> to vector<16x16xbf16>
    %245 = arith.truncf %229 : vector<16x16xf32> to vector<16x16xbf16>
    %cst_130 = arith.constant dense<0.000000e+00> : vector<16x16xf32>
    %246 = tpu.matmul %244, %245, %cst_130 {dimension_numbers = #tpu.dot_dimension_numbers<[1], [0], [0], [1], [0, 0, 1, 1], [], []>} : vector<16x16xbf16>, vector<16x16xbf16>, vector<16x16xf32> -> vector<16x16xf32>
    %c1_131 = arith.constant 1 : index
    %c0_132 = arith.constant 0 : index
    %c0_133 = arith.constant 0 : index
    %c0_134 = arith.constant 0 : index
    %247 = vector.load %arg6[%c1_131, %c0_132, %c0_133, %c0_134] : memref<2x2x16x32xbf16, #tpu.memory_space<vmem>>, vector<1x1x16x32xbf16>
    %248 = vector.shape_cast %247 : vector<1x1x16x32xbf16> to vector<16x32xbf16>
    %249 = arith.truncf %246 : vector<16x16xf32> to vector<16x16xbf16>
    %cst_135 = arith.constant dense<0.000000e+00> : vector<16x32xf32>
    %250 = tpu.matmul %249, %248, %cst_135 {dimension_numbers = #tpu.dot_dimension_numbers<[1], [0], [0], [1], [0, 0, 1, 1], [], []>} : vector<16x16xbf16>, vector<16x32xbf16>, vector<16x32xf32> -> vector<16x32xf32>
    %c1_136 = arith.constant 1 : index
    %c0_137 = arith.constant 0 : index
    %c1_138 = arith.constant 1 : index
    %c0_139 = arith.constant 0 : index
    %c0_140 = arith.constant 0 : index
    %251 = vector.load %arg5[%c1_136, %c0_137, %c1_138, %c0_139, %c0_140] : memref<2x3x2x32x16xbf16, #tpu.memory_space<vmem>>, vector<1x1x1x32x16xbf16>
    %252 = vector.shape_cast %251 : vector<1x1x1x32x16xbf16> to vector<32x16xbf16>
    %253 = arith.truncf %208 : vector<16x32xf32> to vector<16x32xbf16>
    %cst_141 = arith.constant dense<0.000000e+00> : vector<16x16xf32>
    %254 = tpu.matmul %253, %252, %cst_141 {dimension_numbers = #tpu.dot_dimension_numbers<[1], [0], [0], [1], [0, 0, 1, 1], [], []>} : vector<16x32xbf16>, vector<32x16xbf16>, vector<16x16xf32> -> vector<16x16xf32>
    %c17 = arith.constant 17 : index
    %c0_142 = arith.constant 0 : index
    %255 = vector.load %arg4[%c17, %c0_142] : memref<29x64xf32, #tpu.memory_space<vmem>>, vector<1x16xf32>
    %256 = vector.broadcast %255 : vector<1x16xf32> to vector<16x16xf32>
    %257 = arith.addf %254, %256 : vector<16x16xf32>
    %c1_143 = arith.constant 1 : index
    %c1_144 = arith.constant 1 : index
    %c1_145 = arith.constant 1 : index
    %c0_146 = arith.constant 0 : index
    %c0_147 = arith.constant 0 : index
    %258 = vector.load %arg5[%c1_143, %c1_144, %c1_145, %c0_146, %c0_147] : memref<2x3x2x32x16xbf16, #tpu.memory_space<vmem>>, vector<1x1x1x32x16xbf16>
    %259 = vector.shape_cast %258 : vector<1x1x1x32x16xbf16> to vector<32x16xbf16>
    %260 = arith.truncf %208 : vector<16x32xf32> to vector<16x32xbf16>
    %cst_148 = arith.constant dense<0.000000e+00> : vector<16x16xf32>
    %261 = tpu.matmul %260, %259, %cst_148 {dimension_numbers = #tpu.dot_dimension_numbers<[1], [0], [0], [1], [0, 0, 1, 1], [], []>} : vector<16x32xbf16>, vector<32x16xbf16>, vector<16x16xf32> -> vector<16x16xf32>
    %c19 = arith.constant 19 : index
    %c0_149 = arith.constant 0 : index
    %262 = vector.load %arg4[%c19, %c0_149] : memref<29x64xf32, #tpu.memory_space<vmem>>, vector<1x16xf32>
    %263 = vector.broadcast %262 : vector<1x16xf32> to vector<16x16xf32>
    %264 = arith.addf %261, %263 : vector<16x16xf32>
    %c1_150 = arith.constant 1 : index
    %c2_151 = arith.constant 2 : index
    %c1_152 = arith.constant 1 : index
    %c0_153 = arith.constant 0 : index
    %c0_154 = arith.constant 0 : index
    %265 = vector.load %arg5[%c1_150, %c2_151, %c1_152, %c0_153, %c0_154] : memref<2x3x2x32x16xbf16, #tpu.memory_space<vmem>>, vector<1x1x1x32x16xbf16>
    %266 = vector.shape_cast %265 : vector<1x1x1x32x16xbf16> to vector<32x16xbf16>
    %267 = arith.truncf %208 : vector<16x32xf32> to vector<16x32xbf16>
    %cst_155 = arith.constant dense<0.000000e+00> : vector<16x16xf32>
    %268 = tpu.matmul %267, %266, %cst_155 {dimension_numbers = #tpu.dot_dimension_numbers<[1], [0], [0], [1], [0, 0, 1, 1], [], []>} : vector<16x32xbf16>, vector<32x16xbf16>, vector<16x16xf32> -> vector<16x16xf32>
    %c21 = arith.constant 21 : index
    %c0_156 = arith.constant 0 : index
    %269 = vector.load %arg4[%c21, %c0_156] : memref<29x64xf32, #tpu.memory_space<vmem>>, vector<1x16xf32>
    %270 = vector.broadcast %269 : vector<1x16xf32> to vector<16x16xf32>
    %271 = arith.addf %268, %270 : vector<16x16xf32>
    %272 = arith.truncf %257 : vector<16x16xf32> to vector<16x16xbf16>
    %273 = arith.truncf %264 : vector<16x16xf32> to vector<16x16xbf16>
    %cst_157 = arith.constant dense<0.000000e+00> : vector<16x16xf32>
    %274 = tpu.matmul %272, %273, %cst_157 {dimension_numbers = #tpu.dot_dimension_numbers<[1], [1], [0], [0], [0, 0, 1, 0], [], []>} : vector<16x16xbf16>, vector<16x16xbf16>, vector<16x16xf32> -> vector<16x16xf32>
    %275 = arith.addf %274, %47 : vector<16x16xf32>
    %cst_158 = arith.constant dense<0xFF800000> : vector<16xf32>
    %276 = vector.multi_reduction <maximumf>, %275, %cst_158 [1] : vector<16x16xf32> to vector<16xf32>
    %277 = vector.shape_cast %276 : vector<16xf32> to vector<16x1xf32>
    %278 = vector.broadcast %277 : vector<16x1xf32> to vector<16x16xf32>
    %279 = arith.subf %275, %278 : vector<16x16xf32>
    %280 = math.exp %279 : vector<16x16xf32>
    %cst_159 = arith.constant dense<0.000000e+00> : vector<16xf32>
    %281 = vector.multi_reduction <add>, %280, %cst_159 [1] : vector<16x16xf32> to vector<16xf32>
    %282 = vector.shape_cast %281 : vector<16xf32> to vector<16x1xf32>
    %283 = tpu.reciprocal %282 {approx = true} : vector<16x1xf32> -> vector<16x1xf32>
    %284 = vector.broadcast %283 : vector<16x1xf32> to vector<16x16xf32>
    %285 = arith.mulf %280, %284 : vector<16x16xf32>
    %286 = arith.truncf %285 : vector<16x16xf32> to vector<16x16xbf16>
    %287 = arith.truncf %271 : vector<16x16xf32> to vector<16x16xbf16>
    %cst_160 = arith.constant dense<0.000000e+00> : vector<16x16xf32>
    %288 = tpu.matmul %286, %287, %cst_160 {dimension_numbers = #tpu.dot_dimension_numbers<[1], [0], [0], [1], [0, 0, 1, 1], [], []>} : vector<16x16xbf16>, vector<16x16xbf16>, vector<16x16xf32> -> vector<16x16xf32>
    %c1_161 = arith.constant 1 : index
    %c1_162 = arith.constant 1 : index
    %c0_163 = arith.constant 0 : index
    %c0_164 = arith.constant 0 : index
    %289 = vector.load %arg6[%c1_161, %c1_162, %c0_163, %c0_164] : memref<2x2x16x32xbf16, #tpu.memory_space<vmem>>, vector<1x1x16x32xbf16>
    %290 = vector.shape_cast %289 : vector<1x1x16x32xbf16> to vector<16x32xbf16>
    %291 = arith.truncf %288 : vector<16x16xf32> to vector<16x16xbf16>
    %cst_165 = arith.constant dense<0.000000e+00> : vector<16x32xf32>
    %292 = tpu.matmul %291, %290, %cst_165 {dimension_numbers = #tpu.dot_dimension_numbers<[1], [0], [0], [1], [0, 0, 1, 1], [], []>} : vector<16x16xbf16>, vector<16x32xbf16>, vector<16x32xf32> -> vector<16x32xf32>
    %293 = arith.addf %250, %292 : vector<16x32xf32>
    %c22 = arith.constant 22 : index
    %c0_166 = arith.constant 0 : index
    %294 = vector.load %arg4[%c22, %c0_166] : memref<29x64xf32, #tpu.memory_space<vmem>>, vector<1x32xf32>
    %295 = vector.broadcast %294 : vector<1x32xf32> to vector<16x32xf32>
    %296 = arith.addf %293, %295 : vector<16x32xf32>
    %297 = arith.addf %296, %208 : vector<16x32xf32>
    %c23 = arith.constant 23 : index
    %c0_167 = arith.constant 0 : index
    %298 = vector.load %arg4[%c23, %c0_167] : memref<29x64xf32, #tpu.memory_space<vmem>>, vector<1x32xf32>
    %c24 = arith.constant 24 : index
    %c0_168 = arith.constant 0 : index
    %299 = vector.load %arg4[%c24, %c0_168] : memref<29x64xf32, #tpu.memory_space<vmem>>, vector<1x32xf32>
    %cst_169 = arith.constant dense<0.000000e+00> : vector<16xf32>
    %300 = vector.multi_reduction <add>, %297, %cst_169 [1] : vector<16x32xf32> to vector<16xf32>
    %301 = vector.shape_cast %300 : vector<16xf32> to vector<16x1xf32>
    %cst_170 = arith.constant 3.200000e+01 : f32
    %302 = vector.broadcast %cst_170 : f32 to vector<16x1xf32>
    %303 = arith.divf %301, %302 : vector<16x1xf32>
    %304 = vector.broadcast %303 : vector<16x1xf32> to vector<16x32xf32>
    %305 = arith.subf %297, %304 : vector<16x32xf32>
    %306 = arith.mulf %305, %305 : vector<16x32xf32>
    %cst_171 = arith.constant dense<0.000000e+00> : vector<16xf32>
    %307 = vector.multi_reduction <add>, %306, %cst_171 [1] : vector<16x32xf32> to vector<16xf32>
    %308 = vector.shape_cast %307 : vector<16xf32> to vector<16x1xf32>
    %cst_172 = arith.constant 3.200000e+01 : f32
    %309 = vector.broadcast %cst_172 : f32 to vector<16x1xf32>
    %310 = arith.divf %308, %309 : vector<16x1xf32>
    %cst_173 = arith.constant 9.99999996E-13 : f32
    %311 = vector.broadcast %cst_173 : f32 to vector<16x1xf32>
    %312 = arith.addf %310, %311 : vector<16x1xf32>
    %313 = math.rsqrt %312 : vector<16x1xf32>
    %314 = vector.broadcast %313 : vector<16x1xf32> to vector<16x32xf32>
    %315 = arith.mulf %305, %314 : vector<16x32xf32>
    %316 = vector.broadcast %298 : vector<1x32xf32> to vector<16x32xf32>
    %317 = arith.mulf %315, %316 : vector<16x32xf32>
    %318 = vector.broadcast %299 : vector<1x32xf32> to vector<16x32xf32>
    %319 = arith.addf %317, %318 : vector<16x32xf32>
    %c1_174 = arith.constant 1 : index
    %c0_175 = arith.constant 0 : index
    %c0_176 = arith.constant 0 : index
    %320 = vector.load %arg7[%c1_174, %c0_175, %c0_176] : memref<2x32x64xbf16, #tpu.memory_space<vmem>>, vector<1x32x64xbf16>
    %321 = vector.shape_cast %320 : vector<1x32x64xbf16> to vector<32x64xbf16>
    %322 = arith.truncf %319 : vector<16x32xf32> to vector<16x32xbf16>
    %cst_177 = arith.constant dense<0.000000e+00> : vector<16x64xf32>
    %323 = tpu.matmul %322, %321, %cst_177 {dimension_numbers = #tpu.dot_dimension_numbers<[1], [0], [0], [1], [0, 0, 1, 1], [], []>} : vector<16x32xbf16>, vector<32x64xbf16>, vector<16x64xf32> -> vector<16x64xf32>
    %c25 = arith.constant 25 : index
    %c0_178 = arith.constant 0 : index
    %324 = vector.load %arg4[%c25, %c0_178] : memref<29x64xf32, #tpu.memory_space<vmem>>, vector<1x64xf32>
    %325 = vector.broadcast %324 : vector<1x64xf32> to vector<16x64xf32>
    %326 = arith.addf %323, %325 : vector<16x64xf32>
    %cst_179 = arith.constant 5.000000e-01 : f32
    %327 = vector.broadcast %cst_179 : f32 to vector<16x64xf32>
    %328 = arith.mulf %327, %326 : vector<16x64xf32>
    %cst_180 = arith.constant 4.471500e-02 : f32
    %329 = vector.broadcast %cst_180 : f32 to vector<16x64xf32>
    %330 = arith.mulf %329, %326 : vector<16x64xf32>
    %331 = arith.mulf %330, %326 : vector<16x64xf32>
    %332 = arith.mulf %331, %326 : vector<16x64xf32>
    %333 = arith.addf %326, %332 : vector<16x64xf32>
    %cst_181 = arith.constant 0.797884583 : f32
    %334 = vector.broadcast %cst_181 : f32 to vector<16x64xf32>
    %335 = arith.mulf %334, %333 : vector<16x64xf32>
    %336 = math.tanh %335 : vector<16x64xf32>
    %cst_182 = arith.constant 1.000000e+00 : f32
    %337 = vector.broadcast %cst_182 : f32 to vector<16x64xf32>
    %338 = arith.addf %337, %336 : vector<16x64xf32>
    %339 = arith.mulf %328, %338 : vector<16x64xf32>
    %c1_183 = arith.constant 1 : index
    %c0_184 = arith.constant 0 : index
    %c0_185 = arith.constant 0 : index
    %340 = vector.load %arg8[%c1_183, %c0_184, %c0_185] : memref<2x64x32xbf16, #tpu.memory_space<vmem>>, vector<1x64x32xbf16>
    %341 = vector.shape_cast %340 : vector<1x64x32xbf16> to vector<64x32xbf16>
    %342 = arith.truncf %339 : vector<16x64xf32> to vector<16x64xbf16>
    %cst_186 = arith.constant dense<0.000000e+00> : vector<16x32xf32>
    %343 = tpu.matmul %342, %341, %cst_186 {dimension_numbers = #tpu.dot_dimension_numbers<[1], [0], [0], [1], [0, 0, 1, 1], [], []>} : vector<16x64xbf16>, vector<64x32xbf16>, vector<16x32xf32> -> vector<16x32xf32>
    %c26 = arith.constant 26 : index
    %c0_187 = arith.constant 0 : index
    %344 = vector.load %arg4[%c26, %c0_187] : memref<29x64xf32, #tpu.memory_space<vmem>>, vector<1x32xf32>
    %345 = vector.broadcast %344 : vector<1x32xf32> to vector<16x32xf32>
    %346 = arith.addf %343, %345 : vector<16x32xf32>
    %347 = arith.addf %346, %319 : vector<16x32xf32>
    %c27 = arith.constant 27 : index
    %c0_188 = arith.constant 0 : index
    %348 = vector.load %arg4[%c27, %c0_188] : memref<29x64xf32, #tpu.memory_space<vmem>>, vector<1x32xf32>
    %c28 = arith.constant 28 : index
    %c0_189 = arith.constant 0 : index
    %349 = vector.load %arg4[%c28, %c0_189] : memref<29x64xf32, #tpu.memory_space<vmem>>, vector<1x32xf32>
    %cst_190 = arith.constant dense<0.000000e+00> : vector<16xf32>
    %350 = vector.multi_reduction <add>, %347, %cst_190 [1] : vector<16x32xf32> to vector<16xf32>
    %351 = vector.shape_cast %350 : vector<16xf32> to vector<16x1xf32>
    %cst_191 = arith.constant 3.200000e+01 : f32
    %352 = vector.broadcast %cst_191 : f32 to vector<16x1xf32>
    %353 = arith.divf %351, %352 : vector<16x1xf32>
    %354 = vector.broadcast %353 : vector<16x1xf32> to vector<16x32xf32>
    %355 = arith.subf %347, %354 : vector<16x32xf32>
    %356 = arith.mulf %355, %355 : vector<16x32xf32>
    %cst_192 = arith.constant dense<0.000000e+00> : vector<16xf32>
    %357 = vector.multi_reduction <add>, %356, %cst_192 [1] : vector<16x32xf32> to vector<16xf32>
    %358 = vector.shape_cast %357 : vector<16xf32> to vector<16x1xf32>
    %cst_193 = arith.constant 3.200000e+01 : f32
    %359 = vector.broadcast %cst_193 : f32 to vector<16x1xf32>
    %360 = arith.divf %358, %359 : vector<16x1xf32>
    %cst_194 = arith.constant 9.99999996E-13 : f32
    %361 = vector.broadcast %cst_194 : f32 to vector<16x1xf32>
    %362 = arith.addf %360, %361 : vector<16x1xf32>
    %363 = math.rsqrt %362 : vector<16x1xf32>
    %364 = vector.broadcast %363 : vector<16x1xf32> to vector<16x32xf32>
    %365 = arith.mulf %355, %364 : vector<16x32xf32>
    %366 = vector.broadcast %348 : vector<1x32xf32> to vector<16x32xf32>
    %367 = arith.mulf %365, %366 : vector<16x32xf32>
    %368 = vector.broadcast %349 : vector<1x32xf32> to vector<16x32xf32>
    %369 = arith.addf %367, %368 : vector<16x32xf32>
    %370 = vector.extract_strided_slice %369 {offsets = [0, 0], sizes = [1, 32], strides = [1, 1]} : vector<16x32xf32> to vector<1x32xf32>
    %371 = vector.extract_strided_slice %369 {offsets = [8, 0], sizes = [1, 32], strides = [1, 1]} : vector<16x32xf32> to vector<1x32xf32>
    %372 = tpu.concatenate %370, %371 in 0 : vector<1x32xf32>, vector<1x32xf32> -> vector<2x32xf32>
    %c0_195 = arith.constant 0 : index
    %c0_196 = arith.constant 0 : index
    %373 = vector.load %arg9[%c0_195, %c0_196] : memref<32x32xbf16, #tpu.memory_space<vmem>>, vector<32x32xbf16>
    %374 = arith.truncf %372 : vector<2x32xf32> to vector<2x32xbf16>
    %cst_197 = arith.constant dense<0.000000e+00> : vector<2x32xf32>
    %375 = tpu.matmul %374, %373, %cst_197 {dimension_numbers = #tpu.dot_dimension_numbers<[1], [0], [0], [1], [0, 0, 1, 1], [], []>} : vector<2x32xbf16>, vector<32x32xbf16>, vector<2x32xf32> -> vector<2x32xf32>
    %c2_198 = arith.constant 2 : index
    %c0_199 = arith.constant 0 : index
    %376 = vector.load %arg4[%c2_198, %c0_199] : memref<29x64xf32, #tpu.memory_space<vmem>>, vector<1x32xf32>
    %377 = vector.broadcast %376 : vector<1x32xf32> to vector<2x32xf32>
    %378 = arith.addf %375, %377 : vector<2x32xf32>
    %379 = math.tanh %378 : vector<2x32xf32>
    %c0_200 = arith.constant 0 : index
    %c0_201 = arith.constant 0 : index
    %380 = vector.load %arg10[%c0_200, %c0_201] : memref<2x32xf32, #tpu.memory_space<vmem>>, vector<2x32xf32>
    tpu.vector_store %arg10[%c0_200, %c0_201], %379 {strides = array<i32>} : memref<2x32xf32, #tpu.memory_space<vmem>>, vector<2x32xf32>,
    return
  }
}

</mosaic_0001>

<bundles_post_ra>
// kernel: bert_forward.1
= control target key start
LH: loop header
LB: loop body
LE: loop exit
PB: predicated region body
PF: predicated region fallthrough
CT: control target
= control target key end

     0   :  { %v40_v1 = vlaneseq  ;;  %v2904_v3 = vmov 0   ;;  %v2905_v5 = vmov 0.0   ;;  %vm113_vm2 = vcmask 1041408   ;;  %s3481_s0 = inlined_call_operand.vmem [shape: s32[16,1], index: 0, kind: input, shape index: {}]   ;;  %s3482_s1 = inlined_call_operand.vmem [shape: s32[1,16], index: 1, kind: input, shape index: {}]   ;;  %s3483_s2 = inlined_call_operand.vmem [shape: bf16[100,32], index: 2, kind: input, shape index: {}]   ;;  %s3484_s3 = inlined_call_operand.vmem [shape: f32[16,32], index: 3, kind: input, shape index: {}]   ;;  %s3485_s4 = inlined_call_operand.vmem [shape: f32[29,64], index: 4, kind: input, shape index: {}]   ;;  %s3486_s5 = inlined_call_operand.vmem [shape: bf16[2,3,2,32,16], index: 5, kind: input, shape index: {}]   ;;  %s3487_s6 = inlined_call_operand.vmem [shape: bf16[2,2,16,32], index: 6, kind: input, shape index: {}]   ;;  %s3488_s7 = inlined_call_operand.vmem [shape: bf16[2,32,64], index: 7, kind: input, shape index: {}]   ;;  %s3489_s8 = inlined_call_operand.vmem [shape: bf16[2,64,32], index: 8, kind: input, shape index: {}]   ;;  %s3490_s9 = inlined_call_operand.vmem [shape: bf16[32,32], index: 9, kind: input, shape index: {}]   ;;  %s3491_s10 = inlined_call_operand.hbm [shape: f32[2,32], index: 10, kind: output, shape index: {}]  }
   0x1   :  { %v39_v0 = vld [vmem:[%s3482_s1] sm:$0x1]  ;;  %2768 = vset.pattern.permute.xlu0 %v2904_v3  ;;  %v38_v4 = vld [vmem:[%s3481_s0 + $0x8] sm:$0xff]  ;;  %2529 = vmatprep.subr.bf16.mxu0 %v2905_v5  ;;  %v2771_v17 = vld [vmem:[%s3483_s2 + $0x10] sm:$0xff]   ;;  %vm2906_vm6 = vmmov 0  }
   0x2   :  { %v37_v2 = vld [vmem:[%s3481_s0] sm:$0xff]  ;;  %vm208_vm0 = vcmp.ne.s32.totalorder %v39_v0, 0  ;;  %v41_v7 = vand.u32 127, %v40_v1  ;;  %v201_v8 = vshrl.u32 %v40_v1, 7  ;;  %v2770_v10 = vld [vmem:[%s3483_s2 + $0x8] sm:$0xff]   ;;  %2547 = vmatprep.subr.bf16.mxu1 %v2905_v5  ;;  %2543 = vmatprep.mubr.msk.bf16.mxu0 %vm2906_vm6, %v2905_v5  ;;  %v2772_v21 = vld [vmem:[%s3483_s2 + $0x18] sm:$0xff]  }
   0x3   :  { %v2769_v6 = vld [vmem:[%s3483_s2] sm:$0xff]   ;;  %v209_v9 = vsel %vm208_vm0, 1, %v2904_v3  ;;  %43 = vperm.xlu0 %2768, %v37_v2   ;;  %v2775_v18 = vld [vmem:[%s3483_s2 + $0x30] ss:$0 sps:$4 sm:$0x33]   ;;  %2551 = vmatprep.mubr.msk.bf16.mxu1 %vm2906_vm6, %v2905_v5  ;;  %v2774_v24 = vld [vmem:[%s3483_s2 + $0x28] sm:$0xff]  }
   0x4   :  { %2530 = vmatpush3.bf16.msra.mxu0 %v2769_v6  ;;  %v202_v11 = vadd.s32 8, %v201_v8  ;;  %v203_v12 = vshrl.u32 %v201_v8, 3  ;;  %v205_v13 = vshrl.u32 %v41_v7, 3  ;;  %v212_v14 = vsub.s32 0, %v201_v8  ;;  %v2773_v23 = vld [vmem:[%s3483_s2 + $0x20] sm:$0xff]  }
   0x5   :  { %2531 = vmatprep.subr.bf16.mxu0 %v2905_v5  ;;  %v115_v22 = vsel %vm113_vm2, %v2775_v18, 0 }
   0x6   :  { %v204_v15 = vshrl.u32 %v202_v11, 3  ;;  %vm206_vm1 = vcmp.eq.s32.totalorder %v203_v12, %v205_v13  ;;  %v213_v16 = vrot.slane %v209_v9, %v212_v14 }
   0x7   :  { %46 = vperm.xlu0 %2768, %v38_v4  }
   0x8   :  { %2532 = vmatpush3.bf16.msra.mxu0 %v2770_v10  ;;  %vm207_vm3 = vcmp.eq.s32.totalorder %v204_v15, %v205_v13  ;;  %vm214_vm4 = vcmp.eq.s32.totalorder %v213_v16, 1 }
   0x9   :  { %2533 = vmatprep.subr.bf16.mxu0 %v2905_v5  ;;  %vm2989_vm5 = vmand %vm206_vm1, %vm214_vm4 }
   0xa   :  { %vm2997_vm7 = vmand %vm207_vm3, %vm214_vm4 }
   0xc   :  { %2534 = vmatpush3.bf16.msra.mxu0 %v2771_v17 }
   0xd   :  { %2535 = vmatprep.subr.bf16.mxu0 %v2905_v5 }
  0x10   :  { %2536 = vmatpush3.bf16.msra.mxu0 %v2772_v21 }
  0x11   :  { %2537 = vmatprep.subr.bf16.mxu0 %v2905_v5 }
  0x14   :  { %2538 = vmatpush3.bf16.msra.mxu0 %v2773_v23 }
  0x15   :  { %2539 = vmatprep.subr.bf16.mxu0 %v2905_v5 }
  0x18   :  { %2540 = vmatpush3.bf16.msra.mxu0 %v2774_v24 }
  0x19   :  { %2541 = vmatprep.subr.bf16.mxu0 %v2905_v5 }
  0x1c   :  { %2542 = vmatpush3.bf16.msra.mxu0 %v115_v22 }
  0x1d   :  { %2577 = vmatprep.subr.bf16.mxu0 %v2905_v5 }
  0x1e   :  { %15 = vsyncpa [#allocation3], 0  ;;  %vm109_vm10 = vcmask 818176   ;;  %v68_v30 = vld [vmem:[%s3484_s3] sm:$0xff]  ;;  %v69_v32 = vld [vmem:[%s3484_s3 + $0x8] sm:$0xff]  ;;  %vm160_vm11 = vcmask 261120  }
  0x1f   :  { %v2776_v50 = vld [vmem:[%s3486_s5] sm:$0xff]   ;;  %v2777_v51 = vld [vmem:[%s3486_s5 + $0x8] sm:$0xff]   ;;  %vm413_vm12 = vcmask 130048   ;;  %vm1113_vm13 = vcmask 523264   ;;  %vm2186_vm14 = vcmask 1040384   ;;  %s2908_s26 = smov [#allocation2]  }
  0x20   :  { %2548 = vmatpush3.bf16.msra.mxu1 %v2776_v50  ;;  %v2280_v60 = vld [vmem:[%s3485_s4] ss:$0 sm:$0xff]  ;;  %v2281_v0 = vld [vmem:[%s3485_s4 + $0x1] ss:$0 sm:$0xff]  ;;  %v2781_v9 = vld [vmem:[%s3486_s5 + $0x48] sm:$0xff]   ;;  %s2262_s27 = sshll.u32 %s2908_s26, 4  ;;  %s2263_s27 = int_to_ptr.vmem [resolvable:$true] %s2262_s27 }
  0x21   :  { %2549 = vmatprep.subr.bf16.mxu1 %v2905_v5  ;;  %v2778_v4 = vld [vmem:[%s3486_s5 + $0x20] sm:$0xff]   ;;  %vm2254_vm15 = vcmask 254976   ;;  %s2880_s28 = scalar_lea.vmem %s2263_s27, 32  ;;  %p2885_p1 = scmp.lt.s32.totalorder %s2263_s27, %s2263_s27 }
  0x22   :  { %v2780_v8 = vld [vmem:[%s3486_s5 + $0x40] sm:$0xff]   ;;  %p2881_p0 = scmp.ne.s32.totalorder %s2263_s27, %s2880_s28  ;;  %p2886_p2 = scmp.lt.s32.totalorder %s2880_s28, %s2880_s28 }
  0x23   :  { %v2282_v10 = vld [vmem:[%s3485_s4 + $0x3] ss:$0 sm:$0xff]  ;;  %v2290_v18 = vld [vmem:[%s3485_s4 + $0x5] ss:$0 sm:$0xff]  ;;  %v2308_v19 = vld [vmem:[%s3485_s4 + $0x4] ss:$0 sm:$0xff] }
  0x24   :  { %2550 = vmatpush3.bf16.msra.mxu1 %v2777_v51  ;;  %p2887_p3 = por %p2886_p2, %p2885_p1 }
  0x25   :  { %2555 = vmatprep.subr.bf16.mxu1 %v2905_v5 }
  0x26   :  { %p2888_p4 = pnand %p2887_p3, %p2881_p0 }
  0x82   :  { %v44_v25 = vpop.permute.xlu0 %43 }
  0x83   :  { %vm48_vm8 = vcmp.eq.s32.totalorder %v41_v7, %v44_v25 }
  0x84   :  { %v2270_v27 = vsel %vm48_vm8, 1.0, %v2905_v5 }
  0x86   :  { %v47_v26 = vpop.permute.xlu0 %46 }
  0x87   :  { %vm49_vm9 = vcmp.eq.s32.totalorder %v41_v7, %v47_v26  ;;  %v2779_v7 = vld [vmem:[%s3486_s5 + $0x28] sm:$0xff]  }
  0x88   :  { %v2271_v28 = vsel %vm49_vm9, 1.0, %v2905_v5 }
  0x89   :  { %v54_v29 = vpack.c.bf16 %v2271_v28, %v2270_v27 }
  0x8b   :  { %2544 = vmatmul.mubr.msk.bf16.vlgmr.msra.gmra.mrb[0].mxu0 %vm109_vm10, %v54_v29  ;;  %v2298_v29 = vld [vmem:[%s3485_s4 + $0x7] ss:$0 sm:$0xff] }
  0x8c   :  { %2579 = vmatprep.mubr.msk.bf16.mxu0 %vm2906_vm6, %v2905_v5 }
 0x15e   :  { %v151_v31 = vpop.f32.mrb[0].mxu0 }
 0x15f   :  { %v152_v33 = vadd.f32 %v151_v31, %v68_v30  ;;  %v2545_v34 = vpop.f32.mrb[1].mxu0 }
 0x160   :  { %v154_v35 = vpop.f32.mrb[2].mxu0 }
 0x161   :  { %v155_v36 = vadd.f32 %v154_v35, %v69_v32  ;;  %v2546_v37 = vpop.f32.mrb[3].mxu0  ;;  %v161_v38 = vsel %vm160_vm11, %v152_v33, 0.0 }
 0x162   :  { %162 = vadd.xlane.f32.xlu1 %v161_v38  ;;  %v2783_v38 = vld [vmem:[%s3486_s5 + $0x18] sm:$0xff]  }
 0x163   :  { %v164_v39 = vsel %vm160_vm11, %v155_v36, 0.0 }
 0x166   :  { %165 = vadd.xlane.f32.xlu1 %v164_v39  ;;  %v2784_v39 = vld [vmem:[%s3486_s5 + $0x50] sm:$0xff]  }
 0x1ef   :  { %v163_v40 = vpop.xlane.xlu1 %162 }
 0x1f0   :  { %v168_v41 = vmul.f32 0.03125, %v163_v40  ;;  %v2785_v40 = vld [vmem:[%s3486_s5 + $0x58] sm:$0xff]  }
 0x1f2   :  { %v170_v42 = vsub.f32 %v152_v33, %v168_v41  ;;  %v2907_v41 = vmov -1e+09  }
 0x1f3   :  { %v166_v43 = vpop.xlane.xlu1 %165 }
 0x1f4   :  { %v169_v44 = vmul.f32 0.03125, %v166_v43  ;;  %v172_v45 = vmul.f32 %v170_v42, %v170_v42 }
 0x1f6   :  { %v171_v46 = vsub.f32 %v155_v36, %v169_v44  ;;  %v174_v47 = vsel %vm160_vm11, %v172_v45, 0.0  ;;  %v2782_v36 = vld [vmem:[%s3486_s5 + $0x10] sm:$0xff]   ;;  %v3124_v44 = vsel %vm2997_vm7, 0.0, %v2907_v41 }
 0x1f7   :  { %175 = vadd.xlane.f32.xlu0 %v174_v47 }
 0x1f8   :  { %v173_v48 = vmul.f32 %v171_v46, %v171_v46 }
 0x1fa   :  { %v177_v49 = vsel %vm160_vm11, %v173_v48, 0.0 }
 0x1fb   :  { %178 = vadd.xlane.f32.xlu1 %v177_v49 }
 0x284   :  { %v176_v52 = vpop.xlane.xlu0 %175 }
 0x285   :  { %v180_v53 = vmul.f32 0.03125, %v176_v52 }
 0x287   :  { %v182_v54 = vadd.f32 1e-12, %v180_v53 }
 0x288   :  { %v179_v55 = vpop.xlane.xlu1 %178 }
 0x289   :  { %2818 = vrsqrt.f32 %v182_v54  ;;  %v181_v56 = vmul.f32 0.03125, %v179_v55 }
 0x28b   :  { %v183_v57 = vadd.f32 1e-12, %v181_v56 }
 0x28d   :  { %2820 = vrsqrt.f32 %v183_v57 }
 0x293   :  { %v2819_v58 = vpop.eup %2818 }
 0x294   :  { %v186_v59 = vmul.f32 %v2819_v58, %v170_v42  ;;  %v3120_v42 = vsel %vm2989_vm5, 0.0, %v2907_v41  ;;  %v2324_v58 = vld [vmem:[%s3485_s4 + $0x8] ss:$0 sm:$0xff] }
 0x296   :  { %v192_v62 = vmul.f32 %v2280_v60, %v186_v59 }
 0x297   :  { %v2821_v61 = vpop.eup %2820 }
 0x298   :  { %v187_v63 = vmul.f32 %v2821_v61, %v171_v46  ;;  %v3043_v2 = vadd.f32 %v2281_v0, %v192_v62 }
 0x29a   :  { %v193_v1 = vmul.f32 %v2280_v60, %v187_v63 }
 0x29c   :  { %v3045_v3 = vadd.f32 %v2281_v0, %v193_v1 }
 0x29e   :  { %v3052_v6 = vpack.c.bf16 %v3045_v3, %v3043_v2 }
 0x2a0   :  { %2552 = vmatmul.mubr.msk.bf16.vlgmr.msra.gmra.mrb[0].mxu1 %vm160_vm11, %v3052_v6 }
 0x2a1   :  { %2556 = vmatpush3.bf16.msra.mxu1 %v2778_v4  ;;  %2559 = vmatprep.mubr.msk.bf16.mxu1 %vm2906_vm6, %v2905_v5 }
 0x2a2   :  { %2557 = vmatprep.subr.bf16.mxu1 %v2905_v5 }
 0x2a5   :  { %2558 = vmatpush3.bf16.msra.mxu1 %v2779_v7 }
 0x2a6   :  { %2563 = vmatprep.subr.bf16.mxu1 %v2905_v5 }
 0x2a8   :  { %2560 = vmatmul.mubr.msk.bf16.vlgmr.msra.gmra.mrb[4].mxu1 %vm160_vm11, %v3052_v6 }
 0x2a9   :  { %2564 = vmatpush3.bf16.msra.mxu1 %v2780_v8  ;;  %2567 = vmatprep.mubr.msk.bf16.mxu1 %vm2906_vm6, %v2905_v5 }
 0x2aa   :  { %2565 = vmatprep.subr.bf16.mxu1 %v2905_v5 }
 0x2ad   :  { %2566 = vmatpush3.bf16.msra.mxu1 %v2781_v9 }
 0x2ae   :  { %2571 = vmatprep.subr.bf16.mxu1 %v2905_v5 }
 0x2b0   :  { %2568 = vmatmul.mubr.msk.bf16.vlgmr.msra.gmra.mrb[8].mxu1 %vm160_vm11, %v3052_v6 }
 0x2b1   :  { %2573 = vmatprep.mubr.msk.bf16.mxu1 %vm2906_vm6, %v2905_v5 }
 0x373   :  { %v278_v11 = vpop.f32.mrb[0].mxu1 }
 0x374   :  { %v2553_v12 = vpop.f32.mrb[1].mxu1  ;;  %v279_v14 = vadd.f32 %v2282_v10, %v278_v11 }
 0x375   :  { %v281_v13 = vpop.f32.mrb[2].mxu1 }
 0x376   :  { %v282_v15 = vadd.f32 %v2282_v10, %v281_v13  ;;  %v2554_v16 = vpop.f32.mrb[3].mxu1 }
 0x378   :  { %v411_v17 = vpack.c.bf16 %v282_v15, %v279_v14 }
 0x37b   :  { %v341_v21 = vpop.f32.mrb[4].mxu1 }
 0x37c   :  { %v2561_v22 = vpop.f32.mrb[5].mxu1  ;;  %v342_v24 = vadd.f32 %v2290_v18, %v341_v21 }
 0x37d   :  { %v344_v23 = vpop.f32.mrb[6].mxu1 }
 0x37e   :  { %v345_v25 = vadd.f32 %v2290_v18, %v344_v23  ;;  %v2562_v26 = vpop.f32.mrb[7].mxu1 }
 0x37f   :  { %v2787_v26 = vld [vmem:[%s3486_s5 + $0x38] sm:$0xff]  }
 0x380   :  { %v412_v27 = vpack.c.bf16 %v345_v25, %v342_v24  ;;  %v2786_v24 = vld [vmem:[%s3486_s5 + $0x30] sm:$0xff]  }
 0x382   :  { %v418_v28 = vsel %vm413_vm12, %v412_v27, 0 }
 0x383   :  { %v404_v30 = vpop.f32.mrb[8].mxu1  ;;  %2572 = vmatpush3.bf16.xpose.msra.mxu1 %v418_v28 }
 0x384   :  { %v2569_v31 = vpop.f32.mrb[9].mxu1  ;;  %2583 = vmatprep.subr.bf16.mxu1 %v2905_v5  ;;  %v405_v33 = vadd.f32 %v2298_v29, %v404_v30 }
 0x385   :  { %v407_v32 = vpop.f32.mrb[10].mxu1 }
 0x386   :  { %v408_v34 = vadd.f32 %v2298_v29, %v407_v32  ;;  %v2570_v35 = vpop.f32.mrb[11].mxu1  ;;  %v2316_v32 = vld [vmem:[%s3485_s4 + $0x6] ss:$0 sm:$0xff] }
 0x388   :  { %v484_v37 = vpack.c.bf16 %v408_v34, %v405_v33 }
 0x38a   :  { %2574 = vmatmul.mubr.msk.bf16.vlgmr.msra.gmra.mrb[12].mxu1 %vm413_vm12, %v411_v17  ;;  %2578 = vmatpush3.bf16.msra.mxu0 %v484_v37 }
 0x38b   :  { %2584 = vmatpush3.bf16.msra.mxu1 %v2782_v36  ;;  %2587 = vmatprep.mubr.msk.bf16.mxu1 %vm2906_vm6, %v2905_v5 }
 0x38c   :  { %2585 = vmatprep.subr.bf16.mxu1 %v2905_v5  ;;  %2591 = vmatprep.subr.bf16.mxu0 %v2905_v5 }
 0x38f   :  { %2586 = vmatpush3.bf16.msra.mxu1 %v2783_v38 }
 0x390   :  { %2599 = vmatprep.subr.bf16.mxu1 %v2905_v5 }
 0x392   :  { %2588 = vmatmul.mubr.msk.bf16.vlgmr.msra.gmra.mrb[16].mxu1 %vm160_vm11, %v3052_v6 }
 0x393   :  { %2600 = vmatpush3.bf16.msra.mxu1 %v2784_v39  ;;  %2603 = vmatprep.mubr.msk.bf16.mxu1 %vm2906_vm6, %v2905_v5 }
 0x394   :  { %2601 = vmatprep.subr.bf16.mxu1 %v2905_v5 }
 0x397   :  { %2602 = vmatpush3.bf16.msra.mxu1 %v2785_v40 }
 0x398   :  { %2613 = vmatprep.subr.bf16.mxu1 %v2905_v5 }
 0x39a   :  { %2604 = vmatmul.mubr.msk.bf16.vlgmr.msra.gmra.mrb[20].mxu1 %vm160_vm11, %v3052_v6 }
 0x39b   :  { %2615 = vmatprep.mubr.msk.bf16.mxu1 %vm2906_vm6, %v2905_v5 }
 0x45d   :  { %v454_v43 = vpop.f32.mrb[12].mxu1 }
 0x45e   :  { %v455_v45 = vadd.f32 %v454_v43, %v3120_v42  ;;  %v2575_v46 = vpop.f32.mrb[13].mxu1 }
 0x45f   :  { %v457_v47 = vpop.f32.mrb[14].mxu1 }
 0x460   :  { %v458_v48 = vadd.f32 %v457_v47, %v3124_v44  ;;  %v2576_v49 = vpop.f32.mrb[15].mxu1  ;;  %v461_v50 = vsel %vm413_vm12, %v455_v45, -inf }
 0x461   :  { %462 = vmax.xlane.f32.xlu1 %v461_v50 }
 0x462   :  { %v464_v51 = vsel %vm413_vm12, %v458_v48, -inf }
 0x465   :  { %465 = vmax.xlane.f32.xlu1 %v464_v51  ;;  %v588_v20 = vpop.f32.mrb[16].mxu1 }
 0x466   :  { %v2589_v52 = vpop.f32.mrb[17].mxu1  ;;  %v3133_v54 = vadd.f32 %v2308_v19, %v588_v20 }
 0x467   :  { %v591_v53 = vpop.f32.mrb[18].mxu1 }
 0x468   :  { %v3135_v55 = vadd.f32 %v2308_v19, %v591_v53  ;;  %v2590_v56 = vpop.f32.mrb[19].mxu1 }
 0x46a   :  { %v721_v57 = vpack.c.bf16 %v3135_v55, %v3133_v54 }
 0x46d   :  { %v714_v59 = vpop.f32.mrb[20].mxu1 }
 0x46e   :  { %v2605_v60 = vpop.f32.mrb[21].mxu1  ;;  %v715_v62 = vadd.f32 %v2324_v58, %v714_v59 }
 0x46f   :  { %v717_v61 = vpop.f32.mrb[22].mxu1 }
 0x470   :  { %v718_v63 = vadd.f32 %v2324_v58, %v717_v61  ;;  %v2606_v0 = vpop.f32.mrb[23].mxu1  ;;  %v2789_v58 = vld [vmem:[%s3487_s6 + $0x8] sm:$0xff]  }
 0x472   :  { %v793_v1 = vpack.c.bf16 %v718_v63, %v715_v62 }
 0x474   :  { %2614 = vmatpush3.bf16.msra.mxu1 %v793_v1  ;;  %v2788_v1 = vld [vmem:[%s3487_s6] sm:$0xff]  }
 0x475   :  { %2625 = vmatprep.subr.bf16.mxu1 %v2905_v5 }
 0x4ee   :  { %v463_v4 = vpop.xlane.xlu1 %462 }
 0x4ef   :  { %v467_v7 = vsub.f32 %v455_v45, %v463_v4 }
 0x4f1   :  { %v469_v8 = vmul.f32 1.442695, %v467_v7 }
 0x4f2   :  { %v466_v9 = vpop.xlane.xlu1 %465 }
 0x4f3   :  { %2822 = vpow2.f32 %v469_v8  ;;  %v468_v10 = vsub.f32 %v458_v48, %v466_v9 }
 0x4f5   :  { %v471_v11 = vmul.f32 1.442695, %v468_v10 }
 0x4f7   :  { %2824 = vpow2.f32 %v471_v11 }
 0x4fd   :  { %v2823_v12 = vpop.eup %2822 }
 0x4fe   :  { %v473_v13 = vsel %vm413_vm12, %v2823_v12, 0.0 }
 0x4ff   :  { %474 = vadd.xlane.f32.xlu1 %v473_v13 }
 0x501   :  { %v2825_v14 = vpop.eup %2824 }
 0x502   :  { %v476_v15 = vsel %vm413_vm12, %v2825_v14, 0.0 }
 0x503   :  { %477 = vadd.xlane.f32.xlu1 %v476_v15 }
 0x58c   :  { %v475_v16 = vpop.xlane.xlu1 %474 }
 0x58d   :  { %2826 = vrcp.f32 %v475_v16 }
 0x590   :  { %v478_v17 = vpop.xlane.xlu1 %477 }
 0x591   :  { %2828 = vrcp.f32 %v478_v17  ;;  %v2336_v17 = vld [vmem:[%s3485_s4 + $0x9] ss:$0 sm:$0xff] }
 0x597   :  { %v2827_v18 = vpop.eup %2826 }
 0x598   :  { %v481_v22 = vmul.f32 %v2827_v18, %v2823_v12 }
 0x59b   :  { %v2829_v21 = vpop.eup %2828 }
 0x59c   :  { %v482_v23 = vmul.f32 %v2829_v21, %v2825_v14 }
 0x59e   :  { %v483_v25 = vpack.c.bf16 %v482_v23, %v481_v22 }
 0x5a0   :  { %2580 = vmatmul.mubr.msk.bf16.vlgmr.msra.gmra.mrb[4].mxu0 %vm413_vm12, %v483_v25 }
 0x5a1   :  { %2592 = vmatpush3.bf16.msra.mxu0 %v2786_v24  ;;  %2595 = vmatprep.mubr.msk.bf16.mxu0 %vm2906_vm6, %v2905_v5 }
 0x5a2   :  { %2593 = vmatprep.subr.bf16.mxu0 %v2905_v5 }
 0x5a5   :  { %2594 = vmatpush3.bf16.msra.mxu0 %v2787_v26 }
 0x5a6   :  { %2607 = vmatprep.subr.bf16.mxu0 %v2905_v5 }
 0x5a8   :  { %2596 = vmatmul.mubr.msk.bf16.vlgmr.msra.gmra.mrb[8].mxu0 %vm160_vm11, %v3052_v6 }
 0x5a9   :  { %2609 = vmatprep.mubr.msk.bf16.mxu0 %vm2906_vm6, %v2905_v5 }
 0x673   :  { %v522_v27 = vpop.f32.mrb[4].mxu0 }
 0x674   :  { %v2581_v28 = vpop.f32.mrb[5].mxu0 }
 0x675   :  { %v525_v29 = vpop.f32.mrb[6].mxu0 }
 0x676   :  { %v531_v30 = vpack.c.bf16 %v525_v29, %v522_v27  ;;  %v2582_v31 = vpop.f32.mrb[7].mxu0 }
 0x67b   :  { %v651_v33 = vpop.f32.mrb[8].mxu0 }
 0x67c   :  { %v2597_v34 = vpop.f32.mrb[9].mxu0  ;;  %v652_v36 = vadd.f32 %v2316_v32, %v651_v33 }
 0x67d   :  { %v654_v35 = vpop.f32.mrb[10].mxu0 }
 0x67e   :  { %v655_v37 = vadd.f32 %v2316_v32, %v654_v35  ;;  %v2598_v38 = vpop.f32.mrb[11].mxu0 }
 0x680   :  { %v722_v39 = vpack.c.bf16 %v655_v37, %v652_v36 }
 0x682   :  { %v727_v6 = vsel %vm413_vm12, %v722_v39, 0 }
 0x683   :  { %2608 = vmatpush3.bf16.xpose.msra.mxu0 %v727_v6  ;;  %v2791_v6 = vld [vmem:[%s3488_s7 + $0x8] sm:$0xff]  }
 0x684   :  { %2619 = vmatprep.subr.bf16.mxu0 %v2905_v5 }
 0x68a   :  { %2610 = vmatmul.mubr.msk.bf16.vlgmr.msra.gmra.mrb[12].mxu0 %vm413_vm12, %v721_v57 }
 0x68b   :  { %2621 = vmatprep.mubr.msk.bf16.mxu0 %vm2906_vm6, %v2905_v5  ;;  %2620 = vmatpush3.bf16.msra.mxu0 %v2789_v58  ;;  %v2793_v58 = vld [vmem:[%s3489_s8 + $0x8] sm:$0xff]  }
 0x68c   :  { %2631 = vmatprep.subr.bf16.mxu0 %v2905_v5 }
 0x75d   :  { %v763_v40 = vpop.f32.mrb[12].mxu0 }
 0x75e   :  { %v764_v41 = vadd.f32 %v763_v40, %v3120_v42  ;;  %v2611_v43 = vpop.f32.mrb[13].mxu0 }
 0x75f   :  { %v766_v45 = vpop.f32.mrb[14].mxu0 }
 0x760   :  { %v767_v46 = vadd.f32 %v766_v45, %v3124_v44  ;;  %v2612_v47 = vpop.f32.mrb[15].mxu0  ;;  %v770_v48 = vsel %vm413_vm12, %v764_v41, -inf }
 0x761   :  { %771 = vmax.xlane.f32.xlu1 %v770_v48 }
 0x762   :  { %v773_v49 = vsel %vm413_vm12, %v767_v46, -inf }
 0x765   :  { %774 = vmax.xlane.f32.xlu1 %v773_v49  ;;  %v2337_v49 = vld [vmem:[%s3485_s4 + $0xa] ss:$0 sm:$0xff] }
 0x7ee   :  { %v772_v50 = vpop.xlane.xlu1 %771 }
 0x7ef   :  { %v776_v51 = vsub.f32 %v764_v41, %v772_v50 }
 0x7f1   :  { %v778_v19 = vmul.f32 1.442695, %v776_v51 }
 0x7f2   :  { %v775_v20 = vpop.xlane.xlu1 %774 }
 0x7f3   :  { %2830 = vpow2.f32 %v778_v19  ;;  %v777_v52 = vsub.f32 %v767_v46, %v775_v20 }
 0x7f5   :  { %v780_v53 = vmul.f32 1.442695, %v777_v52  ;;  %v2338_v52 = vld [vmem:[%s3485_s4 + $0xb] ss:$0 sm:$0xff] }
 0x7f7   :  { %2832 = vpow2.f32 %v780_v53 }
 0x7fd   :  { %v2831_v54 = vpop.eup %2830 }
 0x7fe   :  { %v782_v55 = vsel %vm413_vm12, %v2831_v54, 0.0 }
 0x7ff   :  { %783 = vadd.xlane.f32.xlu1 %v782_v55 }
 0x801   :  { %v2833_v56 = vpop.eup %2832 }
 0x802   :  { %v785_v57 = vsel %vm413_vm12, %v2833_v56, 0.0 }
 0x803   :  { %786 = vadd.xlane.f32.xlu0 %v785_v57  ;;  %v2792_v57 = vld [vmem:[%s3489_s8] sm:$0xff]  }
 0x88c   :  { %v784_v59 = vpop.xlane.xlu1 %783 }
 0x88d   :  { %2834 = vrcp.f32 %v784_v59  ;;  %v2794_v59 = vld [vmem:[%s3489_s8 + $0x10] sm:$0xff]  }
 0x890   :  { %v787_v60 = vpop.xlane.xlu0 %786 }
 0x891   :  { %2836 = vrcp.f32 %v787_v60  ;;  %v2795_v60 = vld [vmem:[%s3489_s8 + $0x18] sm:$0xff]  }
 0x897   :  { %v2835_v61 = vpop.eup %2834 }
 0x898   :  { %v790_v63 = vmul.f32 %v2835_v61, %v2831_v54  ;;  %v2339_v61 = vld [vmem:[%s3485_s4 + $0xc] ss:$0 sm:$0xff] }
 0x89b   :  { %v2837_v62 = vpop.eup %2836 }
 0x89c   :  { %v791_v0 = vmul.f32 %v2837_v62, %v2833_v56 }
 0x89e   :  { %v792_v4 = vpack.c.bf16 %v791_v0, %v790_v63 }
 0x8a0   :  { %2616 = vmatmul.mubr.msk.bf16.vlgmr.msra.gmra.mrb[24].mxu1 %vm413_vm12, %v792_v4 }
 0x8a1   :  { %2626 = vmatpush3.bf16.msra.mxu1 %v2788_v1  ;;  %2627 = vmatprep.mubr.msk.bf16.mxu1 %vm2906_vm6, %v2905_v5 }
 0x8a2   :  { %2639 = vmatprep.subr.bf16.mxu1 %v2905_v5 }
 0x8a8   :  { %2628 = vmatmul.mubr.msk.bf16.vlgmr.msra.gmra.mrb[28].mxu1 %vm413_vm12, %v531_v30 }
 0x8a9   :  { %2647 = vmatprep.mubr.msk.bf16.mxu1 %vm2906_vm6, %v2905_v5  ;;  %2640 = vmatpush3.bf16.msra.mxu1 %v2792_v57 }
 0x8aa   :  { %2641 = vmatprep.subr.bf16.mxu1 %v2905_v5 }
 0x8ad   :  { %2642 = vmatpush3.bf16.msra.mxu1 %v2793_v58  ;;  %v2349_v58 = vld [vmem:[%s3485_s4 + $0xe] ss:$0 sm:$0xff] }
 0x8ae   :  { %2643 = vmatprep.subr.bf16.mxu1 %v2905_v5 }
 0x8b1   :  { %2644 = vmatpush3.bf16.msra.mxu1 %v2794_v59 }
 0x8b2   :  { %2645 = vmatprep.subr.bf16.mxu1 %v2905_v5 }
 0x8b5   :  { %2646 = vmatpush3.bf16.msra.mxu1 %v2795_v60 }
 0x8b6   :  { %2667 = vmatprep.subr.bf16.mxu1 %v2905_v5 }
 0x973   :  { %v831_v7 = vpop.f32.mrb[24].mxu1 }
 0x974   :  { %v2617_v8 = vpop.f32.mrb[25].mxu1 }
 0x975   :  { %v834_v9 = vpop.f32.mrb[26].mxu1 }
 0x976   :  { %v841_v10 = vpack.c.bf16 %v834_v9, %v831_v7  ;;  %v2618_v11 = vpop.f32.mrb[27].mxu1 }
 0x978   :  { %2622 = vmatmul.mubr.msk.bf16.vlgmr.msra.gmra.mrb[16].mxu0 %vm413_vm12, %v841_v10 }
 0x979   :  { %2635 = vmatprep.mubr.msk.bf16.mxu0 %vm2906_vm6, %v2905_v5 }
 0x97b   :  { %v935_v12 = vpop.f32.mrb[28].mxu1 }
 0x97c   :  { %v2629_v13 = vpop.f32.mrb[29].mxu1 }
 0x97d   :  { %v938_v14 = vpop.f32.mrb[30].mxu1 }
 0x97e   :  { %v2630_v15 = vpop.f32.mrb[31].mxu1 }
 0xa4b   :  { %v885_v16 = vpop.f32.mrb[16].mxu0 }
 0xa4c   :  { %v936_v18 = vadd.f32 %v935_v12, %v885_v16  ;;  %v2623_v21 = vpop.f32.mrb[17].mxu0 }
 0xa4d   :  { %v888_v22 = vpop.f32.mrb[18].mxu0 }
 0xa4e   :  { %v947_v23 = vadd.f32 %v2336_v17, %v936_v18  ;;  %v939_v24 = vadd.f32 %v938_v14, %v888_v22  ;;  %v2624_v25 = vpop.f32.mrb[19].mxu0 }
 0xa50   :  { %v948_v26 = vadd.f32 %v2336_v17, %v939_v24  ;;  %v949_v27 = vadd.f32 %v947_v23, %v3043_v2 }
 0xa52   :  { %v953_v28 = vsel %vm160_vm11, %v949_v27, 0.0  ;;  %v950_v29 = vadd.f32 %v948_v26, %v3045_v3  ;;  %v2790_v3 = vld [vmem:[%s3488_s7] sm:$0xff]  }
 0xa53   :  { %954 = vadd.xlane.f32.xlu1 %v953_v28  ;;  %2632 = vmatpush3.bf16.msra.mxu0 %v2790_v3 }
 0xa54   :  { %v956_v30 = vsel %vm160_vm11, %v950_v29, 0.0  ;;  %2633 = vmatprep.subr.bf16.mxu0 %v2905_v5 }
 0xa55   :  { %957 = vadd.xlane.f32.xlu0 %v956_v30 }
 0xa57   :  { %2634 = vmatpush3.bf16.msra.mxu0 %v2791_v6 }
 0xa58   :  { %2651 = vmatprep.subr.bf16.mxu0 %v2905_v5 }
 0xae0   :  { %v955_v31 = vpop.xlane.xlu1 %954 }
 0xae1   :  { %v959_v32 = vmul.f32 0.03125, %v955_v31 }
 0xae2   :  { %v958_v33 = vpop.xlane.xlu0 %957 }
 0xae3   :  { %v961_v34 = vsub.f32 %v949_v27, %v959_v32  ;;  %v960_v35 = vmul.f32 0.03125, %v958_v33 }
 0xae5   :  { %v962_v36 = vsub.f32 %v950_v29, %v960_v35  ;;  %v963_v37 = vmul.f32 %v961_v34, %v961_v34  ;;  %v2343_v29 = vld [vmem:[%s3485_s4 + $0xd] ss:$0 sm:$0xff] }
 0xae7   :  { %v965_v38 = vsel %vm160_vm11, %v963_v37, 0.0  ;;  %v964_v39 = vmul.f32 %v962_v36, %v962_v36 }
 0xae8   :  { %966 = vadd.xlane.f32.xlu1 %v965_v38 }
 0xae9   :  { %v968_v2 = vsel %vm160_vm11, %v964_v39, 0.0 }
 0xaea   :  { %969 = vadd.xlane.f32.xlu0 %v968_v2 }
 0xb75   :  { %v967_v40 = vpop.xlane.xlu1 %966 }
 0xb76   :  { %v971_v41 = vmul.f32 0.03125, %v967_v40 }
 0xb77   :  { %v970_v43 = vpop.xlane.xlu0 %969 }
 0xb78   :  { %v973_v45 = vadd.f32 1e-12, %v971_v41  ;;  %v972_v46 = vmul.f32 0.03125, %v970_v43 }
 0xb7a   :  { %2838 = vrsqrt.f32 %v973_v45  ;;  %v974_v47 = vadd.f32 1e-12, %v972_v46 }
 0xb7c   :  { %2840 = vrsqrt.f32 %v974_v47 }
 0xb84   :  { %v2839_v48 = vpop.eup %2838 }
 0xb85   :  { %v977_v50 = vmul.f32 %v2839_v48, %v961_v34 }
 0xb86   :  { %v2841_v51 = vpop.eup %2840 }
 0xb87   :  { %v983_v19 = vmul.f32 %v2337_v49, %v977_v50  ;;  %v978_v20 = vmul.f32 %v2841_v51, %v962_v36  ;;  %v2797_v50 = vld [vmem:[%s3486_s5 + $0xa0] sm:$0xff]   ;;  %v2798_v51 = vld [vmem:[%s3486_s5 + $0x68] sm:$0xff]  }
 0xb89   :  { %v984_v53 = vmul.f32 %v2337_v49, %v978_v20  ;;  %v989_v54 = vadd.f32 %v2338_v52, %v983_v19  ;;  %v2796_v49 = vld [vmem:[%s3486_s5 + $0x60] sm:$0xff]   ;;  %v2799_v19 = vld [vmem:[%s3486_s5 + $0xa8] sm:$0xff]  }
 0xb8b   :  { %v990_v55 = vadd.f32 %v2338_v52, %v984_v53 }
 0xb8d   :  { %v995_v56 = vpack.c.bf16 %v990_v55, %v989_v54 }
 0xb8f   :  { %2636 = vmatmul.mubr.msk.bf16.vlgmr.msra.gmra.mrb[20].mxu0 %vm160_vm11, %v995_v56 }
 0xb90   :  { %2655 = vmatprep.mubr.msk.bf16.mxu0 %vm2906_vm6, %v2905_v5  ;;  %2652 = vmatpush3.bf16.msra.mxu0 %v2796_v49 }
 0xb91   :  { %2653 = vmatprep.subr.bf16.mxu0 %v2905_v5 }
 0xb94   :  { %2654 = vmatpush3.bf16.msra.mxu0 %v2798_v51 }
 0xb95   :  { %2659 = vmatprep.subr.bf16.mxu0 %v2905_v5 }
 0xc62   :  { %v1050_v62 = vpop.f32.mrb[20].mxu0 }
 0xc63   :  { %v1051_v63 = vadd.f32 %v2339_v61, %v1050_v62  ;;  %v2637_v0 = vpop.f32.mrb[21].mxu0 }
 0xc64   :  { %v1053_v1 = vpop.f32.mrb[22].mxu0 }
 0xc65   :  { %v1059_v4 = vmul.f32 0.044715, %v1051_v63  ;;  %v1054_v7 = vadd.f32 %v2339_v61, %v1053_v1  ;;  %v2638_v8 = vpop.f32.mrb[23].mxu0  ;;  %v1057_v23 = vmul.f32 0.5, %v1051_v63 }
 0xc67   :  { %v1061_v9 = vmul.f32 %v1059_v4, %v1051_v63  ;;  %v1060_v10 = vmul.f32 0.044715, %v1054_v7  ;;  %v1058_v24 = vmul.f32 0.5, %v1054_v7 }
 0xc69   :  { %v1063_v11 = vmul.f32 %v1061_v9, %v1051_v63  ;;  %v1062_v12 = vmul.f32 %v1060_v10, %v1054_v7  ;;  %v2801_v9 = vld [vmem:[%s3486_s5 + $0x88] sm:$0xff]   ;;  %v2355_v10 = vld [vmem:[%s3485_s4 + $0x10] ss:$0 sm:$0xff] }
 0xc6b   :  { %v1065_v13 = vadd.f32 %v1063_v11, %v1051_v63  ;;  %v1064_v14 = vmul.f32 %v1062_v12, %v1054_v7  ;;  %v2350_v63 = vld [vmem:[%s3485_s4 + $0xf] ss:$0 sm:$0xff]  ;;  %v2371_v12 = vld [vmem:[%s3485_s4 + $0x14] ss:$0 sm:$0xff] }
 0xc6d   :  { %v1067_v15 = vmul.f32 0.7978846, %v1065_v13  ;;  %v1066_v16 = vadd.f32 %v1064_v14, %v1054_v7  ;;  %v2800_v7 = vld [vmem:[%s3486_s5 + $0x80] sm:$0xff]  }
 0xc6f   :  { %2842 = vtanh.f32 %v1067_v15  ;;  %v1068_v17 = vmul.f32 0.7978846, %v1066_v16 }
 0xc71   :  { %2844 = vtanh.f32 %v1068_v17 }
 0xc79   :  { %v2843_v18 = vpop.eup %2842 }
 0xc7a   :  { %v1071_v21 = vadd.f32 1.0, %v2843_v18 }
 0xc7b   :  { %v2845_v22 = vpop.eup %2844 }
 0xc7c   :  { %v1072_v25 = vadd.f32 1.0, %v2845_v22  ;;  %v1073_v26 = vmul.f32 %v1071_v21, %v1057_v23 }
 0xc7e   :  { %v1074_v27 = vmul.f32 %v1072_v25, %v1058_v24 }
 0xc80   :  { %v1083_v28 = vpack.c.bf16 %v1074_v27, %v1073_v26 }
 0xc82   :  { %2648 = vmatmul.mubr.msk.bf16.vlgmr.msra.gmra.mrb[32].mxu1 %vm1113_vm13, %v1083_v28  ;;  %v2363_v28 = vld [vmem:[%s3485_s4 + $0x12] ss:$0 sm:$0xff] }
 0xc83   :  { %2671 = vmatprep.mubr.msk.bf16.mxu1 %vm2906_vm6, %v2905_v5  ;;  %2668 = vmatpush3.bf16.msra.mxu1 %v2797_v50 }
 0xc84   :  { %2669 = vmatprep.subr.bf16.mxu1 %v2905_v5 }
 0xc87   :  { %2670 = vmatpush3.bf16.msra.mxu1 %v2799_v19 }
 0xc88   :  { %2681 = vmatprep.subr.bf16.mxu1 %v2905_v5 }
 0xd55   :  { %v1151_v30 = vpop.f32.mrb[32].mxu1 }
 0xd56   :  { %v1152_v31 = vadd.f32 %v2343_v29, %v1151_v30  ;;  %v2649_v32 = vpop.f32.mrb[33].mxu1 }
 0xd57   :  { %v1154_v33 = vpop.f32.mrb[34].mxu1 }
 0xd58   :  { %v1155_v34 = vadd.f32 %v2343_v29, %v1154_v33  ;;  %v2650_v35 = vpop.f32.mrb[35].mxu1  ;;  %v1158_v36 = vadd.f32 %v1152_v31, %v989_v54 }
 0xd5a   :  { %v1162_v37 = vsel %vm160_vm11, %v1158_v36, 0.0  ;;  %v1159_v38 = vadd.f32 %v1155_v34, %v990_v55 }
 0xd5b   :  { %1163 = vadd.xlane.f32.xlu1 %v1162_v37  ;;  %v2802_v37 = vld [vmem:[%s3486_s5 + $0x70] sm:$0xff]  }
 0xd5c   :  { %v1165_v39 = vsel %vm160_vm11, %v1159_v38, 0.0 }
 0xd5d   :  { %1166 = vadd.xlane.f32.xlu0 %v1165_v39  ;;  %v2804_v39 = vld [vmem:[%s3486_s5 + $0xb0] sm:$0xff]  }
 0xde8   :  { %v1164_v2 = vpop.xlane.xlu1 %1163 }
 0xde9   :  { %v1168_v3 = vmul.f32 0.03125, %v1164_v2  ;;  %v2805_v2 = vld [vmem:[%s3486_s5 + $0xb8] sm:$0xff]  }
 0xdea   :  { %v1167_v6 = vpop.xlane.xlu0 %1166 }
 0xdeb   :  { %v1170_v40 = vsub.f32 %v1158_v36, %v1168_v3  ;;  %v1169_v41 = vmul.f32 0.03125, %v1167_v6 }
 0xded   :  { %v1171_v43 = vsub.f32 %v1159_v38, %v1169_v41  ;;  %v1172_v45 = vmul.f32 %v1170_v40, %v1170_v40  ;;  %v2803_v38 = vld [vmem:[%s3486_s5 + $0x78] sm:$0xff]  }
 0xdef   :  { %v1174_v46 = vsel %vm160_vm11, %v1172_v45, 0.0  ;;  %v1173_v47 = vmul.f32 %v1171_v43, %v1171_v43 }
 0xdf0   :  { %1175 = vadd.xlane.f32.xlu1 %v1174_v46 }
 0xdf1   :  { %v1177_v48 = vsel %vm160_vm11, %v1173_v47, 0.0 }
 0xdf2   :  { %1178 = vadd.xlane.f32.xlu0 %v1177_v48  ;;  %v2383_v48 = vld [vmem:[%s3485_s4 + $0x11] ss:$0 sm:$0xff] }
 0xe7d   :  { %v1176_v20 = vpop.xlane.xlu1 %1175 }
 0xe7e   :  { %v1180_v52 = vmul.f32 0.03125, %v1176_v20 }
 0xe7f   :  { %v1179_v53 = vpop.xlane.xlu0 %1178 }
 0xe80   :  { %v1182_v54 = vadd.f32 1e-12, %v1180_v52  ;;  %v1181_v55 = vmul.f32 0.03125, %v1179_v53 }
 0xe82   :  { %2846 = vrsqrt.f32 %v1182_v54  ;;  %v1183_v56 = vadd.f32 1e-12, %v1181_v55  ;;  %v2399_v54 = vld [vmem:[%s3485_s4 + $0x15] ss:$0 sm:$0xff] }
 0xe84   :  { %2848 = vrsqrt.f32 %v1183_v56 }
 0xe8c   :  { %v2847_v57 = vpop.eup %2846 }
 0xe8d   :  { %v1186_v59 = vmul.f32 %v2847_v57, %v1170_v40 }
 0xe8e   :  { %v2849_v60 = vpop.eup %2848 }
 0xe8f   :  { %v1192_v61 = vmul.f32 %v2349_v58, %v1186_v59  ;;  %v1187_v62 = vmul.f32 %v2849_v60, %v1171_v43 }
 0xe91   :  { %v1193_v0 = vmul.f32 %v2349_v58, %v1187_v62  ;;  %v3268_v1 = vadd.f32 %v2350_v63, %v1192_v61 }
 0xe93   :  { %v3270_v4 = vadd.f32 %v2350_v63, %v1193_v0 }
 0xe95   :  { %v3277_v8 = vpack.c.bf16 %v3270_v4, %v3268_v1 }
 0xe97   :  { %2656 = vmatmul.mubr.msk.bf16.vlgmr.msra.gmra.mrb[24].mxu0 %vm160_vm11, %v3277_v8  ;;  %2672 = vmatmul.mubr.msk.bf16.vlgmr.msra.gmra.mrb[36].mxu1 %vm160_vm11, %v3277_v8 }
 0xe98   :  { %2660 = vmatpush3.bf16.msra.mxu0 %v2800_v7  ;;  %2663 = vmatprep.mubr.msk.bf16.mxu0 %vm2906_vm6, %v2905_v5 }
 0xe99   :  { %2661 = vmatprep.subr.bf16.mxu0 %v2905_v5  ;;  %2683 = vmatprep.mubr.msk.bf16.mxu1 %vm2906_vm6, %v2905_v5 }
 0xe9c   :  { %2662 = vmatpush3.bf16.msra.mxu0 %v2801_v9 }
 0xe9d   :  { %2675 = vmatprep.subr.bf16.mxu0 %v2905_v5 }
 0xe9f   :  { %2664 = vmatmul.mubr.msk.bf16.vlgmr.msra.gmra.mrb[28].mxu0 %vm160_vm11, %v3277_v8 }
 0xea0   :  { %2677 = vmatprep.mubr.msk.bf16.mxu0 %vm2906_vm6, %v2905_v5 }
 0xf6a   :  { %v1260_v11 = vpop.f32.mrb[24].mxu0  ;;  %v1386_v13 = vpop.f32.mrb[36].mxu1 }
 0xf6b   :  { %v2657_v14 = vpop.f32.mrb[25].mxu0  ;;  %v2673_v15 = vpop.f32.mrb[37].mxu1  ;;  %v1261_v18 = vadd.f32 %v2355_v10, %v1260_v11  ;;  %v1387_v21 = vadd.f32 %v2371_v12, %v1386_v13 }
 0xf6c   :  { %v1263_v16 = vpop.f32.mrb[26].mxu0  ;;  %v1389_v17 = vpop.f32.mrb[38].mxu1 }
 0xf6d   :  { %v1264_v22 = vadd.f32 %v2355_v10, %v1263_v16  ;;  %v1390_v23 = vadd.f32 %v2371_v12, %v1389_v17  ;;  %v2658_v24 = vpop.f32.mrb[27].mxu0  ;;  %v2674_v25 = vpop.f32.mrb[39].mxu1 }
 0xf6e   :  { %v2807_v25 = vld [vmem:[%s3486_s5 + $0x98] sm:$0xff]  }
 0xf6f   :  { %v1393_v26 = vpack.c.bf16 %v1264_v22, %v1261_v18  ;;  %v1465_v27 = vpack.c.bf16 %v1390_v23, %v1387_v21  ;;  %v2806_v23 = vld [vmem:[%s3486_s5 + $0x90] sm:$0xff]  }
 0xf71   :  { %2682 = vmatpush3.bf16.msra.mxu1 %v1465_v27 }
 0xf72   :  { %v1323_v29 = vpop.f32.mrb[28].mxu0  ;;  %2695 = vmatprep.subr.bf16.mxu1 %v2905_v5 }
 0xf73   :  { %v2665_v30 = vpop.f32.mrb[29].mxu0  ;;  %v1324_v32 = vadd.f32 %v2363_v28, %v1323_v29 }
 0xf74   :  { %v1326_v31 = vpop.f32.mrb[30].mxu0 }
 0xf75   :  { %v1327_v33 = vadd.f32 %v2363_v28, %v1326_v31  ;;  %v2666_v34 = vpop.f32.mrb[31].mxu0  ;;  %v2391_v31 = vld [vmem:[%s3485_s4 + $0x13] ss:$0 sm:$0xff] }
 0xf77   :  { %v1394_v35 = vpack.c.bf16 %v1327_v33, %v1324_v32 }
 0xf79   :  { %v1399_v36 = vsel %vm413_vm12, %v1394_v35, 0 }
 0xf7a   :  { %2676 = vmatpush3.bf16.xpose.msra.mxu0 %v1399_v36 }
 0xf7b   :  { %2687 = vmatprep.subr.bf16.mxu0 %v2905_v5 }
 0xf81   :  { %2678 = vmatmul.mubr.msk.bf16.vlgmr.msra.gmra.mrb[32].mxu0 %vm413_vm12, %v1393_v26 }
 0xf82   :  { %2688 = vmatpush3.bf16.msra.mxu0 %v2802_v37  ;;  %2691 = vmatprep.mubr.msk.bf16.mxu0 %vm2906_vm6, %v2905_v5 }
 0xf83   :  { %2689 = vmatprep.subr.bf16.mxu0 %v2905_v5 }
 0xf86   :  { %2690 = vmatpush3.bf16.msra.mxu0 %v2803_v38 }
 0xf87   :  { %2703 = vmatprep.subr.bf16.mxu0 %v2905_v5 }
 0xf89   :  { %2692 = vmatmul.mubr.msk.bf16.vlgmr.msra.gmra.mrb[36].mxu0 %vm160_vm11, %v3277_v8 }
 0xf8a   :  { %2704 = vmatpush3.bf16.msra.mxu0 %v2804_v39  ;;  %2707 = vmatprep.mubr.msk.bf16.mxu0 %vm2906_vm6, %v2905_v5 }
 0xf8b   :  { %2705 = vmatprep.subr.bf16.mxu0 %v2905_v5 }
 0xf8e   :  { %2706 = vmatpush3.bf16.msra.mxu0 %v2805_v2 }
 0xf8f   :  { %2717 = vmatprep.subr.bf16.mxu0 %v2905_v5 }
 0xf91   :  { %2708 = vmatmul.mubr.msk.bf16.vlgmr.msra.gmra.mrb[40].mxu0 %vm160_vm11, %v3277_v8 }
 0xf92   :  { %2719 = vmatprep.mubr.msk.bf16.mxu0 %vm2906_vm6, %v2905_v5 }
0x1054   :  { %v1435_v3 = vpop.f32.mrb[32].mxu0 }
0x1055   :  { %v1436_v6 = vadd.f32 %v1435_v3, %v3120_v42  ;;  %v2679_v40 = vpop.f32.mrb[33].mxu0 }
0x1056   :  { %v1438_v41 = vpop.f32.mrb[34].mxu0 }
0x1057   :  { %v1439_v43 = vadd.f32 %v1438_v41, %v3124_v44  ;;  %v2680_v45 = vpop.f32.mrb[35].mxu0  ;;  %v1442_v46 = vsel %vm413_vm12, %v1436_v6, -inf }
0x1058   :  { %1443 = vmax.xlane.f32.xlu1 %v1442_v46 }
0x1059   :  { %v1445_v47 = vsel %vm413_vm12, %v1439_v43, -inf }
0x105a   :  { %1446 = vmax.xlane.f32.xlu0 %v1445_v47 }
0x105c   :  { %v1570_v49 = vpop.f32.mrb[36].mxu0 }
0x105d   :  { %v2693_v50 = vpop.f32.mrb[37].mxu0  ;;  %v3342_v19 = vadd.f32 %v2383_v48, %v1570_v49 }
0x105e   :  { %v1573_v51 = vpop.f32.mrb[38].mxu0 }
0x105f   :  { %v3344_v20 = vadd.f32 %v2383_v48, %v1573_v51  ;;  %v2694_v52 = vpop.f32.mrb[39].mxu0 }
0x1060   :  { %v2809_v52 = vld [vmem:[%s3487_s6 + $0x18] sm:$0xff]  }
0x1061   :  { %v1703_v53 = vpack.c.bf16 %v3344_v20, %v3342_v19 }
0x1064   :  { %v1696_v55 = vpop.f32.mrb[40].mxu0 }
0x1065   :  { %v2709_v56 = vpop.f32.mrb[41].mxu0  ;;  %v1697_v58 = vadd.f32 %v2399_v54, %v1696_v55 }
0x1066   :  { %v1699_v57 = vpop.f32.mrb[42].mxu0 }
0x1067   :  { %v1700_v59 = vadd.f32 %v2399_v54, %v1699_v57  ;;  %v2710_v60 = vpop.f32.mrb[43].mxu0 }
0x1069   :  { %v1775_v61 = vpack.c.bf16 %v1700_v59, %v1697_v58  ;;  %v2808_v59 = vld [vmem:[%s3487_s6 + $0x10] sm:$0xff]  }
0x106b   :  { %2718 = vmatpush3.bf16.msra.mxu0 %v1775_v61 }
0x106c   :  { %2729 = vmatprep.subr.bf16.mxu0 %v2905_v5 }
0x10e5   :  { %v1444_v62 = vpop.xlane.xlu1 %1443 }
0x10e6   :  { %v1448_v63 = vsub.f32 %v1436_v6, %v1444_v62 }
0x10e7   :  { %v1447_v0 = vpop.xlane.xlu0 %1446 }
0x10e8   :  { %v1450_v7 = vmul.f32 1.442695, %v1448_v63  ;;  %v1449_v9 = vsub.f32 %v1439_v43, %v1447_v0 }
0x10ea   :  { %2850 = vpow2.f32 %v1450_v7  ;;  %v1452_v10 = vmul.f32 1.442695, %v1449_v9 }
0x10ec   :  { %2852 = vpow2.f32 %v1452_v10 }
0x10f4   :  { %v2851_v11 = vpop.eup %2850 }
0x10f5   :  { %v1454_v12 = vsel %vm413_vm12, %v2851_v11, 0.0 }
0x10f6   :  { %v2853_v13 = vpop.eup %2852  ;;  %1455 = vadd.xlane.f32.xlu1 %v1454_v12 }
0x10f7   :  { %v1457_v14 = vsel %vm413_vm12, %v2853_v13, 0.0 }
0x10f8   :  { %1458 = vadd.xlane.f32.xlu0 %v1457_v14  ;;  %v2411_v14 = vld [vmem:[%s3485_s4 + $0x16] ss:$0 sm:$0xff] }
0x1183   :  { %v1456_v15 = vpop.xlane.xlu1 %1455 }
0x1184   :  { %2854 = vrcp.f32 %v1456_v15 }
0x1185   :  { %v1459_v16 = vpop.xlane.xlu0 %1458 }
0x1186   :  { %2856 = vrcp.f32 %v1459_v16 }
0x118e   :  { %v2855_v17 = vpop.eup %2854 }
0x118f   :  { %v1462_v21 = vmul.f32 %v2855_v17, %v2851_v11 }
0x1190   :  { %v2857_v18 = vpop.eup %2856 }
0x1191   :  { %v1463_v22 = vmul.f32 %v2857_v18, %v2853_v13 }
0x1193   :  { %v1464_v24 = vpack.c.bf16 %v1463_v22, %v1462_v21 }
0x1195   :  { %2684 = vmatmul.mubr.msk.bf16.vlgmr.msra.gmra.mrb[40].mxu1 %vm413_vm12, %v1464_v24 }
0x1196   :  { %2696 = vmatpush3.bf16.msra.mxu1 %v2806_v23  ;;  %2699 = vmatprep.mubr.msk.bf16.mxu1 %vm2906_vm6, %v2905_v5 }
0x1197   :  { %2697 = vmatprep.subr.bf16.mxu1 %v2905_v5 }
0x119a   :  { %2698 = vmatpush3.bf16.msra.mxu1 %v2807_v25 }
0x119b   :  { %2711 = vmatprep.subr.bf16.mxu1 %v2905_v5 }
0x119d   :  { %2700 = vmatmul.mubr.msk.bf16.vlgmr.msra.gmra.mrb[44].mxu1 %vm160_vm11, %v3277_v8 }
0x119e   :  { %2713 = vmatprep.mubr.msk.bf16.mxu1 %vm2906_vm6, %v2905_v5 }
0x1268   :  { %v1503_v26 = vpop.f32.mrb[40].mxu1 }
0x1269   :  { %v2685_v27 = vpop.f32.mrb[41].mxu1 }
0x126a   :  { %v1506_v28 = vpop.f32.mrb[42].mxu1 }
0x126b   :  { %v1513_v29 = vpack.c.bf16 %v1506_v28, %v1503_v26  ;;  %v2686_v30 = vpop.f32.mrb[43].mxu1 }
0x1270   :  { %v1633_v32 = vpop.f32.mrb[44].mxu1 }
0x1271   :  { %v2701_v33 = vpop.f32.mrb[45].mxu1  ;;  %v1634_v35 = vadd.f32 %v2391_v31, %v1633_v32 }
0x1272   :  { %v1636_v34 = vpop.f32.mrb[46].mxu1 }
0x1273   :  { %v1637_v36 = vadd.f32 %v2391_v31, %v1636_v34  ;;  %v2702_v37 = vpop.f32.mrb[47].mxu1 }
0x1274   :  { %v2811_v37 = vld [vmem:[%s3488_s7 + $0x18] sm:$0xff]  }
0x1275   :  { %v1704_v38 = vpack.c.bf16 %v1637_v36, %v1634_v35 }
0x1277   :  { %v1709_v8 = vsel %vm413_vm12, %v1704_v38, 0 }
0x1278   :  { %2712 = vmatpush3.bf16.xpose.msra.mxu1 %v1709_v8 }
0x1279   :  { %2723 = vmatprep.subr.bf16.mxu1 %v2905_v5 }
0x127f   :  { %2714 = vmatmul.mubr.msk.bf16.vlgmr.msra.gmra.mrb[48].mxu1 %vm413_vm12, %v1703_v53 }
0x1280   :  { %2725 = vmatprep.mubr.msk.bf16.mxu1 %vm2906_vm6, %v2905_v5  ;;  %2724 = vmatpush3.bf16.msra.mxu1 %v2809_v52  ;;  %v2815_v52 = vld [vmem:[%s3489_s8 + $0x38] sm:$0xff]  }
0x1281   :  { %2735 = vmatprep.subr.bf16.mxu1 %v2905_v5 }
0x1352   :  { %v1745_v39 = vpop.f32.mrb[48].mxu1 }
0x1353   :  { %v1746_v2 = vadd.f32 %v1745_v39, %v3120_v42  ;;  %v2715_v3 = vpop.f32.mrb[49].mxu1 }
0x1354   :  { %v1748_v6 = vpop.f32.mrb[50].mxu1 }
0x1355   :  { %v1749_v40 = vadd.f32 %v1748_v6, %v3124_v44  ;;  %v2716_v41 = vpop.f32.mrb[51].mxu1  ;;  %v1752_v43 = vsel %vm413_vm12, %v1746_v2, -inf }
0x1356   :  { %1753 = vmax.xlane.f32.xlu1 %v1752_v43  ;;  %v2412_v41 = vld [vmem:[%s3485_s4 + $0x17] ss:$0 sm:$0xff] }
0x1357   :  { %v1755_v45 = vsel %vm413_vm12, %v1749_v40, -inf }
0x1358   :  { %1756 = vmax.xlane.f32.xlu0 %v1755_v45 }
0x13e3   :  { %v1754_v46 = vpop.xlane.xlu1 %1753 }
0x13e4   :  { %v1758_v47 = vsub.f32 %v1746_v2, %v1754_v46 }
0x13e5   :  { %v1757_v48 = vpop.xlane.xlu0 %1756 }
0x13e6   :  { %v1760_v49 = vmul.f32 1.442695, %v1758_v47  ;;  %v1759_v50 = vsub.f32 %v1749_v40, %v1757_v48  ;;  %v2413_v48 = vld [vmem:[%s3485_s4 + $0x18] ss:$0 sm:$0xff] }
0x13e8   :  { %2858 = vpow2.f32 %v1760_v49  ;;  %v1762_v51 = vmul.f32 1.442695, %v1759_v50 }
0x13ea   :  { %2860 = vpow2.f32 %v1762_v51 }
0x13f2   :  { %v2859_v42 = vpop.eup %2858 }
0x13f3   :  { %v1764_v19 = vsel %vm413_vm12, %v2859_v42, 0.0 }
0x13f4   :  { %v2861_v20 = vpop.eup %2860  ;;  %1765 = vadd.xlane.f32.xlu1 %v1764_v19  ;;  %v2812_v19 = vld [vmem:[%s3489_s8 + $0x20] sm:$0xff]  }
0x13f5   :  { %v1767_v44 = vsel %vm413_vm12, %v2861_v20, 0.0 }
0x13f6   :  { %1768 = vadd.xlane.f32.xlu0 %v1767_v44  ;;  %v2814_v44 = vld [vmem:[%s3489_s8 + $0x30] sm:$0xff]  }
0x1481   :  { %v1766_v53 = vpop.xlane.xlu1 %1765 }
0x1482   :  { %2862 = vrcp.f32 %v1766_v53  ;;  %v2418_v53 = vld [vmem:[%s3485_s4 + $0x19] ss:$0 sm:$0xff] }
0x1483   :  { %v1769_v54 = vpop.xlane.xlu0 %1768 }
0x1484   :  { %2864 = vrcp.f32 %v1769_v54 }
0x148c   :  { %v2863_v55 = vpop.eup %2862 }
0x148d   :  { %v1772_v57 = vmul.f32 %v2863_v55, %v2859_v42 }
0x148e   :  { %v2865_v56 = vpop.eup %2864 }
0x148f   :  { %v1773_v58 = vmul.f32 %v2865_v56, %v2861_v20  ;;  %v2813_v20 = vld [vmem:[%s3489_s8 + $0x28] sm:$0xff]  }
0x1491   :  { %v1774_v60 = vpack.c.bf16 %v1773_v58, %v1772_v57 }
0x1493   :  { %2720 = vmatmul.mubr.msk.bf16.vlgmr.msra.gmra.mrb[44].mxu0 %vm413_vm12, %v1774_v60 }
0x1494   :  { %2730 = vmatpush3.bf16.msra.mxu0 %v2808_v59  ;;  %2731 = vmatprep.mubr.msk.bf16.mxu0 %vm2906_vm6, %v2905_v5 }
0x1495   :  { %2743 = vmatprep.subr.bf16.mxu0 %v2905_v5 }
0x149b   :  { %2732 = vmatmul.mubr.msk.bf16.vlgmr.msra.gmra.mrb[48].mxu0 %vm413_vm12, %v1513_v29 }
0x149c   :  { %2751 = vmatprep.mubr.msk.bf16.mxu0 %vm2906_vm6, %v2905_v5  ;;  %2744 = vmatpush3.bf16.msra.mxu0 %v2812_v19 }
0x149d   :  { %2745 = vmatprep.subr.bf16.mxu0 %v2905_v5 }
0x14a0   :  { %2746 = vmatpush3.bf16.msra.mxu0 %v2813_v20 }
0x14a1   :  { %2747 = vmatprep.subr.bf16.mxu0 %v2905_v5 }
0x14a4   :  { %2748 = vmatpush3.bf16.msra.mxu0 %v2814_v44  ;;  %v2437_v44 = vld [vmem:[%s3485_s4 + $0x1c] ss:$0 sm:$0xff] }
0x14a5   :  { %2749 = vmatprep.subr.bf16.mxu0 %v2905_v5 }
0x14a8   :  { %2750 = vmatpush3.bf16.msra.mxu0 %v2815_v52 }
0x1566   :  { %v1813_v61 = vpop.f32.mrb[44].mxu0 }
0x1567   :  { %v2721_v62 = vpop.f32.mrb[45].mxu0 }
0x1568   :  { %v1816_v63 = vpop.f32.mrb[46].mxu0 }
0x1569   :  { %v1823_v0 = vpack.c.bf16 %v1816_v63, %v1813_v61  ;;  %v2722_v7 = vpop.f32.mrb[47].mxu0 }
0x156b   :  { %2726 = vmatmul.mubr.msk.bf16.vlgmr.msra.gmra.mrb[52].mxu1 %vm413_vm12, %v1823_v0 }
0x156c   :  { %2739 = vmatprep.mubr.msk.bf16.mxu1 %vm2906_vm6, %v2905_v5 }
0x156e   :  { %v1917_v9 = vpop.f32.mrb[48].mxu0 }
0x156f   :  { %v2733_v10 = vpop.f32.mrb[49].mxu0 }
0x1570   :  { %v1920_v11 = vpop.f32.mrb[50].mxu0 }
0x1571   :  { %v2734_v12 = vpop.f32.mrb[51].mxu0 }
0x163e   :  { %v1867_v13 = vpop.f32.mrb[52].mxu1 }
0x163f   :  { %v1918_v15 = vadd.f32 %v1917_v9, %v1867_v13  ;;  %v2727_v16 = vpop.f32.mrb[53].mxu1 }
0x1640   :  { %v1870_v17 = vpop.f32.mrb[54].mxu1 }
0x1641   :  { %v1929_v18 = vadd.f32 %v2411_v14, %v1918_v15  ;;  %v1921_v21 = vadd.f32 %v1920_v11, %v1870_v17  ;;  %v2728_v22 = vpop.f32.mrb[55].mxu1 }
0x1643   :  { %v1930_v23 = vadd.f32 %v2411_v14, %v1921_v21  ;;  %v1931_v24 = vadd.f32 %v1929_v18, %v3268_v1 }
0x1645   :  { %v1935_v25 = vsel %vm160_vm11, %v1931_v24, 0.0  ;;  %v1932_v26 = vadd.f32 %v1930_v23, %v3270_v4  ;;  %v2810_v4 = vld [vmem:[%s3488_s7 + $0x10] sm:$0xff]  }
0x1646   :  { %1936 = vadd.xlane.f32.xlu1 %v1935_v25  ;;  %2736 = vmatpush3.bf16.msra.mxu1 %v2810_v4 }
0x1647   :  { %v1938_v27 = vsel %vm160_vm11, %v1932_v26, 0.0  ;;  %2737 = vmatprep.subr.bf16.mxu1 %v2905_v5 }
0x1648   :  { %1939 = vadd.xlane.f32.xlu0 %v1938_v27 }
0x164a   :  { %2738 = vmatpush3.bf16.msra.mxu1 %v2811_v37 }
0x164b   :  { %2755 = vmatprep.subr.bf16.mxu1 %v2905_v5 }
0x16d3   :  { %v1937_v28 = vpop.xlane.xlu1 %1936 }
0x16d4   :  { %v1941_v29 = vmul.f32 0.03125, %v1937_v28 }
0x16d5   :  { %v1940_v30 = vpop.xlane.xlu0 %1939 }
0x16d6   :  { %v1943_v31 = vsub.f32 %v1931_v24, %v1941_v29  ;;  %v1942_v32 = vmul.f32 0.03125, %v1940_v30  ;;  %v2430_v24 = vld [vmem:[%s3485_s4 + $0x1a] ss:$0 sm:$0xff] }
0x16d8   :  { %v1944_v33 = vsub.f32 %v1932_v26, %v1942_v32  ;;  %v1945_v34 = vmul.f32 %v1943_v31, %v1943_v31 }
0x16da   :  { %v1947_v35 = vsel %vm160_vm11, %v1945_v34, 0.0  ;;  %v1946_v36 = vmul.f32 %v1944_v33, %v1944_v33 }
0x16db   :  { %1948 = vadd.xlane.f32.xlu1 %v1947_v35 }
0x16dc   :  { %v1950_v1 = vsel %vm160_vm11, %v1946_v36, 0.0 }
0x16dd   :  { %1951 = vadd.xlane.f32.xlu0 %v1950_v1 }
0x1768   :  { %v1949_v38 = vpop.xlane.xlu1 %1948 }
0x1769   :  { %v1953_v8 = vmul.f32 0.03125, %v1949_v38 }
0x176a   :  { %v1952_v39 = vpop.xlane.xlu0 %1951 }
0x176b   :  { %v1955_v2 = vadd.f32 1e-12, %v1953_v8  ;;  %v1954_v3 = vmul.f32 0.03125, %v1952_v39 }
0x176d   :  { %2866 = vrsqrt.f32 %v1955_v2  ;;  %v1956_v6 = vadd.f32 1e-12, %v1954_v3 }
0x176f   :  { %2868 = vrsqrt.f32 %v1956_v6  ;;  %v2816_v6 = vld [vmem:[%s3490_s9] sm:$0xff]  }
0x1777   :  { %v2867_v40 = vpop.eup %2866 }
0x1778   :  { %v1959_v43 = vmul.f32 %v2867_v40, %v1943_v31  ;;  %v2817_v40 = vld [vmem:[%s3490_s9 + $0x8] sm:$0xff]  }
0x1779   :  { %v2869_v45 = vpop.eup %2868 }
0x177a   :  { %v1965_v46 = vmul.f32 %v2412_v41, %v1959_v43  ;;  %v1960_v47 = vmul.f32 %v2869_v45, %v1944_v33 }
0x177c   :  { %v1966_v49 = vmul.f32 %v2412_v41, %v1960_v47  ;;  %v1971_v50 = vadd.f32 %v2413_v48, %v1965_v46 }
0x177e   :  { %v1972_v51 = vadd.f32 %v2413_v48, %v1966_v49 }
0x1780   :  { %v1978_v42 = vpack.c.bf16 %v1972_v51, %v1971_v50 }
0x1782   :  { %2740 = vmatmul.mubr.msk.bf16.vlgmr.msra.gmra.mrb[56].mxu1 %vm160_vm11, %v1978_v42 }
0x1783   :  { %2759 = vmatprep.mubr.msk.bf16.mxu1 %vm2906_vm6, %v2905_v5  ;;  %2756 = vmatpush3.bf16.msra.mxu1 %v2816_v6 }
0x1784   :  { %2757 = vmatprep.subr.bf16.mxu1 %v2905_v5  ;;  %v2436_v5 = vld [vmem:[%s3485_s4 + $0x1b] ss:$0 sm:$0xff] }
0x1787   :  { %2758 = vmatpush3.bf16.msra.mxu1 %v2817_v40 }
0x1855   :  { %v2033_v54 = vpop.f32.mrb[56].mxu1 }
0x1856   :  { %v2034_v55 = vadd.f32 %v2418_v53, %v2033_v54  ;;  %v2741_v56 = vpop.f32.mrb[57].mxu1 }
0x1857   :  { %v2036_v57 = vpop.f32.mrb[58].mxu1 }
0x1858   :  { %v2042_v58 = vmul.f32 0.044715, %v2034_v55  ;;  %v2037_v59 = vadd.f32 %v2418_v53, %v2036_v57  ;;  %v2742_v60 = vpop.f32.mrb[59].mxu1  ;;  %v2040_v16 = vmul.f32 0.5, %v2034_v55  ;;  %v2438_v57 = vld [vmem:[%s3485_s4 + $0x2] ss:$0 sm:$0xff] }
0x185a   :  { %v2044_v61 = vmul.f32 %v2042_v58, %v2034_v55  ;;  %v2043_v62 = vmul.f32 0.044715, %v2037_v59  ;;  %v2041_v17 = vmul.f32 0.5, %v2037_v59 }
0x185c   :  { %v2046_v63 = vmul.f32 %v2044_v61, %v2034_v55  ;;  %v2045_v0 = vmul.f32 %v2043_v62, %v2037_v59 }
0x185e   :  { %v2048_v7 = vadd.f32 %v2046_v63, %v2034_v55  ;;  %v2047_v9 = vmul.f32 %v2045_v0, %v2037_v59 }
0x1860   :  { %v2050_v10 = vmul.f32 0.7978846, %v2048_v7  ;;  %v2049_v11 = vadd.f32 %v2047_v9, %v2037_v59 }
0x1862   :  { %2870 = vtanh.f32 %v2050_v10  ;;  %v2051_v12 = vmul.f32 0.7978846, %v2049_v11 }
0x1864   :  { %2872 = vtanh.f32 %v2051_v12 }
0x186c   :  { %v2871_v13 = vpop.eup %2870 }
0x186d   :  { %v2054_v14 = vadd.f32 1.0, %v2871_v13 }
0x186e   :  { %v2873_v15 = vpop.eup %2872 }
0x186f   :  { %v2055_v18 = vadd.f32 1.0, %v2873_v15  ;;  %v2056_v21 = vmul.f32 %v2054_v14, %v2040_v16 }
0x1871   :  { %v2057_v22 = vmul.f32 %v2055_v18, %v2041_v17 }
0x1873   :  { %v2067_v23 = vpack.c.bf16 %v2057_v22, %v2056_v21 }
0x1875   :  { %2752 = vmatmul.mubr.msk.bf16.vlgmr.msra.gmra.mrb[52].mxu0 %vm1113_vm13, %v2067_v23 }
0x1948   :  { %v2134_v25 = vpop.f32.mrb[52].mxu0 }
0x1949   :  { %v2135_v26 = vadd.f32 %v2430_v24, %v2134_v25  ;;  %v2753_v27 = vpop.f32.mrb[53].mxu0 }
0x194a   :  { %v2137_v28 = vpop.f32.mrb[54].mxu0 }
0x194b   :  { %v2138_v29 = vadd.f32 %v2430_v24, %v2137_v28  ;;  %v2754_v30 = vpop.f32.mrb[55].mxu0  ;;  %v2141_v31 = vadd.f32 %v2135_v26, %v1971_v50 }
0x194d   :  { %v2145_v32 = vsel %vm160_vm11, %v2141_v31, 0.0  ;;  %v2142_v33 = vadd.f32 %v2138_v29, %v1972_v51 }
0x194e   :  { %2146 = vadd.xlane.f32.xlu0 %v2145_v32 }
0x194f   :  { %v2148_v34 = vsel %vm160_vm11, %v2142_v33, 0.0 }
0x1950   :  { %2149 = vadd.xlane.f32.xlu1 %v2148_v34 }
0x19db   :  { %v2147_v35 = vpop.xlane.xlu0 %2146 }
0x19dc   :  { %v2151_v36 = vmul.f32 0.03125, %v2147_v35 }
0x19dd   :  { %v2150_v1 = vpop.xlane.xlu1 %2149 }
0x19de   :  { %v2153_v4 = vsub.f32 %v2141_v31, %v2151_v36  ;;  %v2152_v37 = vmul.f32 0.03125, %v2150_v1 }
0x19e0   :  { %v2154_v38 = vsub.f32 %v2142_v33, %v2152_v37  ;;  %v2155_v8 = vmul.f32 %v2153_v4, %v2153_v4 }
0x19e2   :  { %v2157_v39 = vsel %vm160_vm11, %v2155_v8, 0.0  ;;  %v2156_v2 = vmul.f32 %v2154_v38, %v2154_v38 }
0x19e3   :  { %2158 = vadd.xlane.f32.xlu0 %v2157_v39 }
0x19e4   :  { %v2160_v3 = vsel %vm160_vm11, %v2156_v2, 0.0 }
0x19e5   :  { %2161 = vadd.xlane.f32.xlu1 %v2160_v3 }
0x1a70   :  { %v2159_v41 = vpop.xlane.xlu0 %2158 }
0x1a71   :  { %v2163_v43 = vmul.f32 0.03125, %v2159_v41 }
0x1a72   :  { %v2162_v45 = vpop.xlane.xlu1 %2161 }
0x1a73   :  { %v2165_v46 = vadd.f32 1e-12, %v2163_v43  ;;  %v2164_v47 = vmul.f32 0.03125, %v2162_v45 }
0x1a75   :  { %2874 = vrsqrt.f32 %v2165_v46  ;;  %v2166_v48 = vadd.f32 1e-12, %v2164_v47 }
0x1a77   :  { %2876 = vrsqrt.f32 %v2166_v48 }
0x1a7f   :  { %v2875_v49 = vpop.eup %2874 }
0x1a80   :  { %v2169_v50 = vmul.f32 %v2875_v49, %v2153_v4 }
0x1a81   :  { %v2877_v51 = vpop.eup %2876 }
0x1a82   :  { %v2170_v42 = vmul.f32 %v2877_v51, %v2154_v38  ;;  %v2175_v19 = vmul.f32 %v2436_v5, %v2169_v50 }
0x1a84   :  { %v2176_v20 = vmul.f32 %v2436_v5, %v2170_v42  ;;  %v2181_v53 = vadd.f32 %v2437_v44, %v2175_v19 }
0x1a86   :  { %v2182_v52 = vadd.f32 %v2437_v44, %v2176_v20 }
0x1a88   :  { %v2184_v54 = vrot.slane %v2182_v52, 7 }
0x1a8a   :  { %v2187_v55 = vsel %vm2186_vm14, %v2181_v53, %v2184_v54 }
0x1a8b   :  { %v2192_v56 = vpack.c.bf16 %v2187_v55, %v2187_v55 }
0x1a8d   :  { %2760 = vmatmul.mubr.msk.bf16.vlgmr.msra.gmra.mrb[60].mxu1 %vm160_vm11, %v2192_v56 }
0x1b60   :  { %v2247_v58 = vpop.f32.mrb[60].mxu1 }
0x1b61   :  { %v2248_v59 = vadd.f32 %v2438_v57, %v2247_v58  ;;  %v2761_v60 = vpop.f32.mrb[61].mxu1 }
0x1b62   :  { %v2250_v61 = vpop.f32.mrb[62].mxu1 }
0x1b63   :  { %2878 = vtanh.f32 %v2248_v59  ;;  %v2762_v62 = vpop.f32.mrb[63].mxu1 }
0x1b6d   :  { %v2879_v63 = vpop.eup %2878 }
0x1b6e   :  { %2255 = vst.msk [vmem:[#allocation2] sm:$0x3] %vm2254_vm15, %v2879_v63 }
0x1b6f   :  { %2891 = shalt.err (!%p2888_p4)
}
0x1b70   :  { %s2892_s30 = scalar_lea.hbm %s3491_s10, 32 }
0x1b71   :  { %p2893_p5 = scmp.ne.s32.totalorder %s3491_s10, %s2892_s30  ;;  %p2896_p6 = scmp.lt.u32.totalorder %s2892_s30, %s3491_s10 }
0x1b73   :  { %p2898_p7 = pnand %p2896_p6, %p2893_p5 }
0x1b75   :  { %2901 = shalt.err (!%p2898_p7)
}
0x1b76   :  { %2265 = dma.vmem_to_hbm [thread:$0]  %s2263_s27, 32, %s3491_s10, [#allocation3]  }
0x1b77   :  { %2902 = dma.done.wait [#allocation3], 32  }
0x1b78   :  { %2903 = vsyncadd [#allocation3], 4294967264 }
0x1b79   :  { %2269 = vsyncpa [#allocation3], 1 }

</bundles_post_ra>
